<compile_context>
chip_gen: v6e
topology: v6e:2x2x1
jax: 0.10.0
libtpu: 0.0.40
codegen_flags: <defaults>
</compile_context>

<pallas_src>
import functools
import math

import jax
import jax.numpy as jnp
from jax import lax
from jax.experimental import pallas as pl
from jax.experimental.pallas import tpu as pltpu


# ----------------- small config (consistent with the Llama Block) -----------------
VOCAB = 256
BLOCK_SIZE = 64
N_LAYER = 2
N_HEAD = 4
N_KV_HEAD = 2
N_DIM = 128
MULTIPLE_OF = 128
NORM_EPS = 1e-5
HEAD_DIM = N_DIM // N_HEAD           # 32 (even, RoPE-friendly)
GROUP = N_HEAD // N_KV_HEAD          # 2  (exercises the repeat_kv / GQA path)
QD = N_HEAD * HEAD_DIM               # 128 query feature width
KD = N_KV_HEAD * HEAD_DIM            # 64  key/value feature width
ROT_DIM = QD + KD                    # 192 columns (q||k) that receive RoPE
QKV_COLS = ROT_DIM + KD + ROT_DIM    # 448 : [ q||k | v | (q||k)@rot ]


def _ffn_hidden_dim(n_dim, multiple_of):
    h = int(2 * (n_dim * 4) / 3)
    return multiple_of * ((h + multiple_of - 1) // multiple_of)


HIDDEN = _ffn_hidden_dim(N_DIM, MULTIPLE_OF)   # 384


# ----------------------------- fused model kernel -----------------------------
def _fused_model_kernel(x_ref, cos_ref, sin_ref,
                        n1_ref, wqkv_ref, proj_ref, n2_ref, w13_ref, w2_ref,
                        normf_ref, head_ref,
                        o_ref,
                        x_sc, attn_sc,
                        *, eps, scale, seq, b_tile):
    layer = pl.program_id(1)

    # Load the token slab into the residual-stream carry on the first layer step.
    @pl.when(layer == 0)
    def _():
        x_sc[...] = x_ref[...]

    x = x_sc[...]                                            # (M, D) f32

    # ---- RMSNorm 1 (f32 statistics) ----
    var = jnp.mean(x * x, axis=-1, keepdims=True)
    h = (x * lax.rsqrt(var + eps)) * n1_ref[0]

    # ---- fused QKV projection with pre-folded RoPE rotation columns ----
    qkv = jnp.dot(h.astype(jnp.bfloat16), wqkv_ref[0],
                  preferred_element_type=jnp.float32)        # (M, 448)

    # RoPE (interleaved-pair semantics, identical to PyTorch apply_rope):
    #   rotated = (q||k)*cos + ((q||k)@rot)*sin, with the @rot folded into wqkv.
    qk = qkv[:, :ROT_DIM] * cos_ref[...] + qkv[:, ROT_DIM + KD:] * sin_ref[...]
    q = qk[:, :QD].astype(jnp.bfloat16)                      # (M, QD)
    k = qk[:, QD:].astype(jnp.bfloat16)                      # (M, KD)
    v = qkv[:, ROT_DIM:ROT_DIM + KD].astype(jnp.bfloat16)    # (M, KD) (no RoPE on v)

    # ---- causal GQA attention: GROUP q-heads stacked along rows per kv head ----
    rows = lax.broadcasted_iota(jnp.int32, (GROUP * seq, seq), 0) % seq
    cols = lax.broadcasted_iota(jnp.int32, (GROUP * seq, seq), 1)
    causal = cols <= rows                                    # (GROUP*T, T)

    for b in range(b_tile):                                  # static unroll
        r0 = b * seq
        for kv in range(N_KV_HEAD):                          # static unroll
            c0 = kv * HEAD_DIM
            qg = jnp.concatenate(
                [q[r0:r0 + seq,
                   (kv * GROUP + g) * HEAD_DIM:(kv * GROUP + g + 1) * HEAD_DIM]
                 for g in range(GROUP)], axis=0)             # (GROUP*T, Dh)
            kh = k[r0:r0 + seq, c0:c0 + HEAD_DIM]            # (T, Dh)
            vh = v[r0:r0 + seq, c0:c0 + HEAD_DIM]            # (T, Dh)
            # contract last dims directly (no explicit k.T transpose)
            s = lax.dot_general(qg, kh, (((1,), (1,)), ((), ())),
                                preferred_element_type=jnp.float32) * scale
            s = jnp.where(causal, s, -1e30)
            m = jnp.max(s, axis=-1, keepdims=True)           # f32 softmax
            e = jnp.exp(s - m)
            denom = jnp.sum(e, axis=-1, keepdims=True)
            pv = jnp.dot(e.astype(jnp.bfloat16), vh,
                         preferred_element_type=jnp.float32)  # (GROUP*T, Dh)
            # normalize AFTER P@V; reciprocal goes to the (idle) EUP slot.
            pv = pv * pl.reciprocal(denom, approx=True)
            for g in range(GROUP):
                hh = kv * GROUP + g
                attn_sc[r0:r0 + seq, hh * HEAD_DIM:(hh + 1) * HEAD_DIM] = \
                    pv[g * seq:(g + 1) * seq, :]

    attn = jnp.dot(attn_sc[...].astype(jnp.bfloat16), proj_ref[0],
                   preferred_element_type=jnp.float32)       # (M, D)
    x1 = x + attn                                            # residual (f32)

    # ---- RMSNorm 2 + fused SwiGLU FFN ----
    var2 = jnp.mean(x1 * x1, axis=-1, keepdims=True)
    h2 = (x1 * lax.rsqrt(var2 + eps)) * n2_ref[0]
    h13 = jnp.dot(h2.astype(jnp.bfloat16), w13_ref[0],
                  preferred_element_type=jnp.float32)        # (M, 2*HIDDEN)
    h1 = h13[:, :HIDDEN]
    h3 = h13[:, HIDDEN:]
    g13 = (h1 * jax.nn.sigmoid(h1)) * h3                     # SwiGLU (f32)
    f = jnp.dot(g13.astype(jnp.bfloat16), w2_ref[0],
                preferred_element_type=jnp.float32)          # (M, D)
    x2 = x1 + f                                              # residual (f32)
    x_sc[...] = x2                                           # carry to next layer

    # ---- final RMSNorm + tied LM head, only on the last layer step ----
    @pl.when(layer == pl.num_programs(1) - 1)
    def _():
        varf = jnp.mean(x2 * x2, axis=-1, keepdims=True)
        hf = (x2 * lax.rsqrt(varf + eps)) * normf_ref[...]
        o_ref[...] = jnp.dot(hf.astype(jnp.bfloat16), head_ref[...],
                             preferred_element_type=jnp.float32)


def fused_model(x_flat, cos_bt, sin_bt, stacked, norm_w, lm_head, *,
                seq, num_token_tiles):
    """x_flat: (B*T, D) f32 -> logits (B*T, VOCAB) f32.  ONE pallas_call total."""
    M, D = x_flat.shape
    L = stacked["wqkv"].shape[0]
    assert M % num_token_tiles == 0
    m_tile = M // num_token_tiles
    assert m_tile % seq == 0
    b_tile = m_tile // seq

    xmap = lambda i, l: (i, 0)            # token-tile blocked, resident across layers
    lmap3 = lambda i, l: (l, 0, 0)        # per-layer stacked weights
    cmap2 = lambda i, l: (0, 0)           # fully resident constants

    kernel = functools.partial(
        _fused_model_kernel, eps=NORM_EPS,
        scale=1.0 / math.sqrt(HEAD_DIM), seq=seq, b_tile=b_tile)

    return pl.pallas_call(
        kernel,
        out_shape=jax.ShapeDtypeStruct((M, VOCAB), jnp.float32),
        grid=(num_token_tiles, L),
        in_specs=[
            pl.BlockSpec((m_tile, D), xmap),             # x (flattened tokens)
            pl.BlockSpec((m_tile, ROT_DIM), xmap),       # cos (interleave-expanded)
            pl.BlockSpec((m_tile, ROT_DIM), xmap),       # sin
            pl.BlockSpec((1, 1, D), lmap3),              # norm1 weight
            pl.BlockSpec((1, D, QKV_COLS), lmap3),       # wq||wk | wv | (wq||wk)@rot
            pl.BlockSpec((1, QD, D), lmap3),             # out projection
            pl.BlockSpec((1, 1, D), lmap3),              # norm2 weight
            pl.BlockSpec((1, D, 2 * HIDDEN), lmap3),     # w1 || w3
            pl.BlockSpec((1, HIDDEN, D), lmap3),         # w2
            pl.BlockSpec((1, D), cmap2),                 # final norm weight
            pl.BlockSpec((D, VOCAB), cmap2),             # tied LM head
        ],
        out_specs=pl.BlockSpec((m_tile, VOCAB), xmap),
        scratch_shapes=[
            pltpu.VMEM((m_tile, D), jnp.float32),        # residual-stream carry
            pltpu.VMEM((m_tile, QD), jnp.float32),       # attention output accumulator
        ],
        compiler_params=pltpu.CompilerParams(
            dimension_semantics=("parallel", "arbitrary")),
    )(x_flat, cos_bt, sin_bt,
      stacked["norm1"], stacked["wqkv"], stacked["proj"],
      stacked["norm2"], stacked["w13"], stacked["w2"],
      norm_w, lm_head)


# ----------------------------- RoPE tables / weight folding -----------------------------
def precompute_rope_tables(head_dim, seq_len, n_rope_heads, theta=10000.0):
    inv = 1.0 / theta ** (jnp.arange(0, head_dim, 2, dtype=jnp.float32) / head_dim)
    freqs = jnp.arange(seq_len, dtype=jnp.float32)[:, None] * inv[None, :]   # (S, Dh/2)
    cos = jnp.repeat(jnp.cos(freqs), 2, axis=-1)            # (S, Dh), interleaved pairs
    sin = jnp.repeat(jnp.sin(freqs), 2, axis=-1)
    return jnp.tile(cos, (1, n_rope_heads)), jnp.tile(sin, (1, n_rope_heads))


def _fold_rope_rotation(wqk):
    """Exact fold of the pair-rotation into the weight:
       out[:, 2i] = -wqk[:, 2i+1], out[:, 2i+1] = wqk[:, 2i]  (so h@out == (h@wqk)@rot)."""
    w = wqk.reshape(wqk.shape[0], -1, 2)
    return jnp.stack([-w[..., 1], w[..., 0]], axis=-1).reshape(wqk.shape)


# ----------------------------- parameter init -----------------------------
def init_params(key):
    key, sub = jax.random.split(key)
    tok = 0.02 * jax.random.normal(sub, (VOCAB, N_DIM), jnp.float32)

    n1s, wqkvs, projs, n2s, w13s, w2s = [], [], [], [], [], []
    for _ in range(N_LAYER):
        key, k1, k2, k3, k4, k5, k6, k7 = jax.random.split(key, 8)
        wq = 0.02 * jax.random.normal(k1, (N_DIM, QD), jnp.float32)
        wk = 0.02 * jax.random.normal(k2, (N_DIM, KD), jnp.float32)
        wv = 0.02 * jax.random.normal(k3, (N_DIM, KD), jnp.float32)
        wqk = jnp.concatenate([wq, wk], axis=1)                     # (D, ROT_DIM)
        wqkv = jnp.concatenate([wqk, wv, _fold_rope_rotation(wqk)], axis=1)  # (D, 448)
        w1 = 0.02 * jax.random.normal(k5, (N_DIM, HIDDEN), jnp.float32)
        w3 = 0.02 * jax.random.normal(k7, (N_DIM, HIDDEN), jnp.float32)

        n1s.append(jnp.ones((1, N_DIM), jnp.float32))
        wqkvs.append(wqkv.astype(jnp.bfloat16))
        projs.append((0.02 * jax.random.normal(k4, (QD, N_DIM), jnp.float32)
                      ).astype(jnp.bfloat16))
        n2s.append(jnp.ones((1, N_DIM), jnp.float32))
        w13s.append(jnp.concatenate([w1, w3], axis=1).astype(jnp.bfloat16))
        w2s.append((0.02 * jax.random.normal(k6, (HIDDEN, N_DIM), jnp.float32)
                    ).astype(jnp.bfloat16))

    return {
        "tok_embed": tok,                                   # embedding gather stays f32
        "lm_head": tok.T.astype(jnp.bfloat16),              # tied head, pre-transposed
        "stacked": {                                        # per-layer weights stacked on axis 0
            "norm1": jnp.stack(n1s), "wqkv": jnp.stack(wqkvs),
            "proj": jnp.stack(projs), "norm2": jnp.stack(n2s),
            "w13": jnp.stack(w13s), "w2": jnp.stack(w2s),
        },
        "norm_w": jnp.ones((1, N_DIM), jnp.float32),
    }


# ----------------------------- model forward (jitted) -----------------------------
@functools.partial(jax.jit, static_argnames=("num_token_tiles",))
def llama_forward(params, idx, cos_bt, sin_bt, num_token_tiles=1):
    B, T = idx.shape
    x = params["tok_embed"][idx].reshape(B * T, N_DIM)      # flatten (B, T) -> M tokens
    logits = fused_model(x, cos_bt, sin_bt, params["stacked"], params["norm_w"],
                         params["lm_head"], seq=T, num_token_tiles=num_token_tiles)
    return logits.reshape(B, T, VOCAB)
    # TODO(synk): dropout is a no-op (p = 0.0 / eval mode) — intentionally omitted.


def _pick_num_token_tiles(batch):
    """v7x has 2 TensorCores/chip -> keep a 2-way 'parallel' token split there.
       v5e/v6e have 1 TC -> collapse to one slab (grid steps are pure overhead)."""
    try:
        kind = jax.devices()[0].device_kind.lower()
    except Exception:
        return 1
    if ("v7" in kind or "7x" in kind) and batch % 2 == 0:
        return 2
    return 1


if __name__ == "__main__":
    key = jax.random.PRNGKey(0)
    kp, ki = jax.random.split(key)
    params = init_params(kp)

    B, T = 2, 16
    assert T <= BLOCK_SIZE
    idx = jax.random.randint(ki, (B, T), 0, VOCAB, dtype=jnp.int32)

    # RoPE tables computed once (hoisted) and tiled over the flattened batch axis.
    cos_full, sin_full = precompute_rope_tables(HEAD_DIM, BLOCK_SIZE, N_HEAD + N_KV_HEAD)
    cos_bt = jnp.tile(cos_full[:T], (B, 1))                 # row b*T+t -> position t
    sin_bt = jnp.tile(sin_full[:T], (B, 1))

    ntiles = _pick_num_token_tiles(B)
    logits = llama_forward(params, idx, cos_bt, sin_bt, num_token_tiles=ntiles)
    jax.block_until_ready(logits)
    assert logits.shape == (B, T, VOCAB)
    assert bool(jnp.all(jnp.isfinite(logits)))
    print("KERNEL_OK")
</pallas_src>

<mosaic_0001>
module attributes {stable_mosaic.version = 11 : i64} {
  func.func @_fused_model_kernel(%arg0: i32, %arg1: i32, %arg2: memref<32x128xf32, #tpu.memory_space<vmem>>, %arg3: memref<32x192xf32, #tpu.memory_space<vmem>>, %arg4: memref<32x192xf32, #tpu.memory_space<vmem>>, %arg5: memref<1x1x128xf32, #tpu.memory_space<vmem>>, %arg6: memref<1x128x448xbf16, #tpu.memory_space<vmem>>, %arg7: memref<1x128x128xbf16, #tpu.memory_space<vmem>>, %arg8: memref<1x1x128xf32, #tpu.memory_space<vmem>>, %arg9: memref<1x128x768xbf16, #tpu.memory_space<vmem>>, %arg10: memref<1x384x128xbf16, #tpu.memory_space<vmem>>, %arg11: memref<1x128xf32, #tpu.memory_space<vmem>>, %arg12: memref<128x256xbf16, #tpu.memory_space<vmem>>, %arg13: memref<32x256xf32, #tpu.memory_space<vmem>>, %arg14: memref<32x128xf32, #tpu.memory_space<vmem>>, %arg15: memref<32x128xf32, #tpu.memory_space<vmem>>) attributes {dimension_semantics = [#tpu.dimension_semantics<parallel>, #tpu.dimension_semantics<arbitrary>], iteration_bounds = array<i64: 1, 2>, scalar_prefetch = 0 : i64, scratch_operands = 2 : i64, tpu.core_type = #tpu.core_type<tc>, window_params = [{transform_indices = @transform_0, window_bounds = array<i64: 32, 128>}, {transform_indices = @transform_1, window_bounds = array<i64: 32, 192>}, {transform_indices = @transform_2, window_bounds = array<i64: 32, 192>}, {transform_indices = @transform_3, window_bounds = array<i64: 1, 1, 128>}, {transform_indices = @transform_4, window_bounds = array<i64: 1, 128, 448>}, {transform_indices = @transform_5, window_bounds = array<i64: 1, 128, 128>}, {transform_indices = @transform_6, window_bounds = array<i64: 1, 1, 128>}, {transform_indices = @transform_7, window_bounds = array<i64: 1, 128, 768>}, {transform_indices = @transform_8, window_bounds = array<i64: 1, 384, 128>}, {pipeline_mode = #tpu.pipeline_mode<synchronous>, transform_indices = @transform_9, window_bounds = array<i64: 1, 128>}, {pipeline_mode = #tpu.pipeline_mode<synchronous>, transform_indices = @transform_10, window_bounds = array<i64: 128, 256>}, {transform_indices = @transform_11, window_bounds = array<i64: 32, 256>}]} {
    %c0_i32 = arith.constant 0 : i32
    %0 = arith.cmpi eq, %arg1, %c0_i32 : i32
    %1 = arith.extui %0 : i1 to i32
    %c0_i32_0 = arith.constant 0 : i32
    %2 = arith.cmpi ne, %1, %c0_i32_0 : i32
    scf.if %2 {
      %c0_80 = arith.constant 0 : index
      %c0_81 = arith.constant 0 : index
      %200 = vector.load %arg2[%c0_80, %c0_81] : memref<32x128xf32, #tpu.memory_space<vmem>>, vector<32x128xf32>
      %c0_82 = arith.constant 0 : index
      %c0_83 = arith.constant 0 : index
      %201 = vector.load %arg14[%c0_82, %c0_83] : memref<32x128xf32, #tpu.memory_space<vmem>>, vector<32x128xf32>
      tpu.vector_store %arg14[%c0_82, %c0_83], %200 {strides = array<i32>} : memref<32x128xf32, #tpu.memory_space<vmem>>, vector<32x128xf32>,
    } else {
    }
    %c0 = arith.constant 0 : index
    %c0_1 = arith.constant 0 : index
    %3 = vector.load %arg14[%c0, %c0_1] : memref<32x128xf32, #tpu.memory_space<vmem>>, vector<32x128xf32>
    %4 = arith.mulf %3, %3 : vector<32x128xf32>
    %cst = arith.constant dense<0.000000e+00> : vector<32xf32>
    %5 = vector.multi_reduction <add>, %4, %cst [1] : vector<32x128xf32> to vector<32xf32>
    %6 = vector.shape_cast %5 : vector<32xf32> to vector<32x1xf32>
    %cst_2 = arith.constant 1.280000e+02 : f32
    %7 = vector.broadcast %cst_2 : f32 to vector<32x1xf32>
    %8 = arith.divf %6, %7 : vector<32x1xf32>
    %cst_3 = arith.constant 9.99999974E-6 : f32
    %9 = vector.broadcast %cst_3 : f32 to vector<32x1xf32>
    %10 = arith.addf %8, %9 : vector<32x1xf32>
    %11 = math.rsqrt %10 : vector<32x1xf32>
    %12 = vector.broadcast %11 : vector<32x1xf32> to vector<32x128xf32>
    %13 = arith.mulf %3, %12 : vector<32x128xf32>
    %c0_4 = arith.constant 0 : index
    %c0_5 = arith.constant 0 : index
    %c0_6 = arith.constant 0 : index
    %14 = vector.load %arg5[%c0_4, %c0_5, %c0_6] : memref<1x1x128xf32, #tpu.memory_space<vmem>>, vector<1x1x128xf32>
    %15 = vector.shape_cast %14 : vector<1x1x128xf32> to vector<1x128xf32>
    %16 = vector.broadcast %15 : vector<1x128xf32> to vector<32x128xf32>
    %17 = arith.mulf %13, %16 : vector<32x128xf32>
    %18 = arith.truncf %17 : vector<32x128xf32> to vector<32x128xbf16>
    %c0_7 = arith.constant 0 : index
    %c0_8 = arith.constant 0 : index
    %c0_9 = arith.constant 0 : index
    %19 = vector.load %arg6[%c0_7, %c0_8, %c0_9] : memref<1x128x448xbf16, #tpu.memory_space<vmem>>, vector<1x128x448xbf16>
    %20 = vector.shape_cast %19 : vector<1x128x448xbf16> to vector<128x448xbf16>
    %cst_10 = arith.constant dense<0.000000e+00> : vector<32x448xf32>
    %21 = tpu.matmul %18, %20, %cst_10 {dimension_numbers = #tpu.dot_dimension_numbers<[1], [0], [0], [1], [0, 0, 1, 1], [], []>} : vector<32x128xbf16>, vector<128x448xbf16>, vector<32x448xf32> -> vector<32x448xf32>
    %22 = vector.extract_strided_slice %21 {offsets = [0, 0], sizes = [32, 192], strides = [1, 1]} : vector<32x448xf32> to vector<32x192xf32>
    %c0_11 = arith.constant 0 : index
    %c0_12 = arith.constant 0 : index
    %23 = vector.load %arg3[%c0_11, %c0_12] : memref<32x192xf32, #tpu.memory_space<vmem>>, vector<32x192xf32>
    %24 = arith.mulf %22, %23 : vector<32x192xf32>
    %25 = vector.extract_strided_slice %21 {offsets = [0, 256], sizes = [32, 192], strides = [1, 1]} : vector<32x448xf32> to vector<32x192xf32>
    %c0_13 = arith.constant 0 : index
    %c0_14 = arith.constant 0 : index
    %26 = vector.load %arg4[%c0_13, %c0_14] : memref<32x192xf32, #tpu.memory_space<vmem>>, vector<32x192xf32>
    %27 = arith.mulf %25, %26 : vector<32x192xf32>
    %28 = arith.addf %24, %27 : vector<32x192xf32>
    %29 = vector.extract_strided_slice %28 {offsets = [0, 0], sizes = [32, 128], strides = [1, 1]} : vector<32x192xf32> to vector<32x128xf32>
    %30 = arith.truncf %29 : vector<32x128xf32> to vector<32x128xbf16>
    %31 = vector.extract_strided_slice %28 {offsets = [0, 128], sizes = [32, 64], strides = [1, 1]} : vector<32x192xf32> to vector<32x64xf32>
    %32 = arith.truncf %31 : vector<32x64xf32> to vector<32x64xbf16>
    %33 = vector.extract_strided_slice %21 {offsets = [0, 192], sizes = [32, 64], strides = [1, 1]} : vector<32x448xf32> to vector<32x64xf32>
    %34 = arith.truncf %33 : vector<32x64xf32> to vector<32x64xbf16>
    %35 = tpu.iota {dimensions = array<i32: 0>} : vector<32x16xi32>
    %c16_i32 = arith.constant 16 : i32
    %c0_i32_15 = arith.constant 0 : i32
    %36 = arith.cmpi eq, %c16_i32, %c0_i32_15 : i32
    %c1_i32 = arith.constant 1 : i32
    %37 = arith.select %36, %c1_i32, %c16_i32 : i32
    %38 = vector.broadcast %37 : i32 to vector<32x16xi32>
    %39 = arith.remsi %35, %38 : vector<32x16xi32>
    %c0_i32_16 = arith.constant 0 : i32
    %40 = vector.broadcast %c0_i32_16 : i32 to vector<32x16xi32>
    %41 = arith.cmpi ne, %39, %40 : vector<32x16xi32>
    %c0_i32_17 = arith.constant 0 : i32
    %42 = vector.broadcast %c0_i32_17 : i32 to vector<32x16xi32>
    %43 = arith.cmpi slt, %39, %42 : vector<32x16xi32>
    %c0_i32_18 = arith.constant 0 : i32
    %44 = arith.cmpi slt, %37, %c0_i32_18 : i32
    %45 = vector.broadcast %44 : i1 to vector<32x16xi1>
    %46 = vector.broadcast %45 : vector<32x16xi1> to vector<32x16xi1>
    %47 = arith.xori %43, %46 : vector<32x16xi1>
    %48 = arith.andi %47, %41 : vector<32x16xi1>
    %49 = vector.broadcast %37 : i32 to vector<32x16xi32>
    %50 = arith.addi %39, %49 : vector<32x16xi32>
    %51 = arith.select %48, %50, %39 : vector<32x16xi1>, vector<32x16xi32>
    %52 = tpu.iota {dimensions = array<i32: 1>} : vector<32x16xi32>
    %53 = arith.cmpi sle, %52, %51 : vector<32x16xi32>
    %54 = vector.extract_strided_slice %30 {offsets = [0, 0], sizes = [16, 32], strides = [1, 1]} : vector<32x128xbf16> to vector<16x32xbf16>
    %55 = vector.extract_strided_slice %30 {offsets = [0, 32], sizes = [16, 32], strides = [1, 1]} : vector<32x128xbf16> to vector<16x32xbf16>
    %56 = tpu.concatenate %54, %55 in 0 : vector<16x32xbf16>, vector<16x32xbf16> -> vector<32x32xbf16>
    %57 = vector.extract_strided_slice %32 {offsets = [0, 0], sizes = [16, 32], strides = [1, 1]} : vector<32x64xbf16> to vector<16x32xbf16>
    %58 = vector.extract_strided_slice %34 {offsets = [0, 0], sizes = [16, 32], strides = [1, 1]} : vector<32x64xbf16> to vector<16x32xbf16>
    %cst_19 = arith.constant dense<0.000000e+00> : vector<32x16xf32>
    %59 = tpu.matmul %56, %57, %cst_19 {dimension_numbers = #tpu.dot_dimension_numbers<[1], [1], [0], [0], [0, 0, 1, 0], [], []>} : vector<32x32xbf16>, vector<16x32xbf16>, vector<32x16xf32> -> vector<32x16xf32>
    %cst_20 = arith.constant 0.176776692 : f32
    %60 = vector.broadcast %cst_20 : f32 to vector<32x16xf32>
    %61 = arith.mulf %59, %60 : vector<32x16xf32>
    %cst_21 = arith.constant -1.000000e+30 : f32
    %62 = vector.broadcast %cst_21 : f32 to vector<32x16xf32>
    %63 = arith.select %53, %61, %62 : vector<32x16xi1>, vector<32x16xf32>
    %cst_22 = arith.constant dense<0xFF800000> : vector<32xf32>
    %64 = vector.multi_reduction <maximumf>, %63, %cst_22 [1] : vector<32x16xf32> to vector<32xf32>
    %65 = vector.shape_cast %64 : vector<32xf32> to vector<32x1xf32>
    %66 = vector.broadcast %65 : vector<32x1xf32> to vector<32x16xf32>
    %67 = arith.subf %63, %66 : vector<32x16xf32>
    %68 = math.exp %67 : vector<32x16xf32>
    %cst_23 = arith.constant dense<0.000000e+00> : vector<32xf32>
    %69 = vector.multi_reduction <add>, %68, %cst_23 [1] : vector<32x16xf32> to vector<32xf32>
    %70 = vector.shape_cast %69 : vector<32xf32> to vector<32x1xf32>
    %71 = arith.truncf %68 : vector<32x16xf32> to vector<32x16xbf16>
    %cst_24 = arith.constant dense<0.000000e+00> : vector<32x32xf32>
    %72 = tpu.matmul %71, %58, %cst_24 {dimension_numbers = #tpu.dot_dimension_numbers<[1], [0], [0], [1], [0, 0, 1, 1], [], []>} : vector<32x16xbf16>, vector<16x32xbf16>, vector<32x32xf32> -> vector<32x32xf32>
    %73 = tpu.reciprocal %70 {approx = true} : vector<32x1xf32> -> vector<32x1xf32>
    %74 = vector.broadcast %73 : vector<32x1xf32> to vector<32x32xf32>
    %75 = arith.mulf %72, %74 : vector<32x32xf32>
    %76 = vector.extract_strided_slice %75 {offsets = [0, 0], sizes = [16, 32], strides = [1, 1]} : vector<32x32xf32> to vector<16x32xf32>
    %c0_25 = arith.constant 0 : index
    %c0_26 = arith.constant 0 : index
    %77 = vector.load %arg15[%c0_25, %c0_26] : memref<32x128xf32, #tpu.memory_space<vmem>>, vector<16x32xf32>
    tpu.vector_store %arg15[%c0_25, %c0_26], %76 {strides = array<i32>} : memref<32x128xf32, #tpu.memory_space<vmem>>, vector<16x32xf32>,
    %78 = vector.extract_strided_slice %75 {offsets = [16, 0], sizes = [16, 32], strides = [1, 1]} : vector<32x32xf32> to vector<16x32xf32>
    %c0_27 = arith.constant 0 : index
    %c32 = arith.constant 32 : index
    %79 = vector.load %arg15[%c0_27, %c32] : memref<32x128xf32, #tpu.memory_space<vmem>>, vector<16x32xf32>
    tpu.vector_store %arg15[%c0_27, %c32], %78 {strides = array<i32>} : memref<32x128xf32, #tpu.memory_space<vmem>>, vector<16x32xf32>,
    %80 = vector.extract_strided_slice %30 {offsets = [0, 64], sizes = [16, 32], strides = [1, 1]} : vector<32x128xbf16> to vector<16x32xbf16>
    %81 = vector.extract_strided_slice %30 {offsets = [0, 96], sizes = [16, 32], strides = [1, 1]} : vector<32x128xbf16> to vector<16x32xbf16>
    %82 = tpu.concatenate %80, %81 in 0 : vector<16x32xbf16>, vector<16x32xbf16> -> vector<32x32xbf16>
    %83 = vector.extract_strided_slice %32 {offsets = [0, 32], sizes = [16, 32], strides = [1, 1]} : vector<32x64xbf16> to vector<16x32xbf16>
    %84 = vector.extract_strided_slice %34 {offsets = [0, 32], sizes = [16, 32], strides = [1, 1]} : vector<32x64xbf16> to vector<16x32xbf16>
    %cst_28 = arith.constant dense<0.000000e+00> : vector<32x16xf32>
    %85 = tpu.matmul %82, %83, %cst_28 {dimension_numbers = #tpu.dot_dimension_numbers<[1], [1], [0], [0], [0, 0, 1, 0], [], []>} : vector<32x32xbf16>, vector<16x32xbf16>, vector<32x16xf32> -> vector<32x16xf32>
    %cst_29 = arith.constant 0.176776692 : f32
    %86 = vector.broadcast %cst_29 : f32 to vector<32x16xf32>
    %87 = arith.mulf %85, %86 : vector<32x16xf32>
    %cst_30 = arith.constant -1.000000e+30 : f32
    %88 = vector.broadcast %cst_30 : f32 to vector<32x16xf32>
    %89 = arith.select %53, %87, %88 : vector<32x16xi1>, vector<32x16xf32>
    %cst_31 = arith.constant dense<0xFF800000> : vector<32xf32>
    %90 = vector.multi_reduction <maximumf>, %89, %cst_31 [1] : vector<32x16xf32> to vector<32xf32>
    %91 = vector.shape_cast %90 : vector<32xf32> to vector<32x1xf32>
    %92 = vector.broadcast %91 : vector<32x1xf32> to vector<32x16xf32>
    %93 = arith.subf %89, %92 : vector<32x16xf32>
    %94 = math.exp %93 : vector<32x16xf32>
    %cst_32 = arith.constant dense<0.000000e+00> : vector<32xf32>
    %95 = vector.multi_reduction <add>, %94, %cst_32 [1] : vector<32x16xf32> to vector<32xf32>
    %96 = vector.shape_cast %95 : vector<32xf32> to vector<32x1xf32>
    %97 = arith.truncf %94 : vector<32x16xf32> to vector<32x16xbf16>
    %cst_33 = arith.constant dense<0.000000e+00> : vector<32x32xf32>
    %98 = tpu.matmul %97, %84, %cst_33 {dimension_numbers = #tpu.dot_dimension_numbers<[1], [0], [0], [1], [0, 0, 1, 1], [], []>} : vector<32x16xbf16>, vector<16x32xbf16>, vector<32x32xf32> -> vector<32x32xf32>
    %99 = tpu.reciprocal %96 {approx = true} : vector<32x1xf32> -> vector<32x1xf32>
    %100 = vector.broadcast %99 : vector<32x1xf32> to vector<32x32xf32>
    %101 = arith.mulf %98, %100 : vector<32x32xf32>
    %102 = vector.extract_strided_slice %101 {offsets = [0, 0], sizes = [16, 32], strides = [1, 1]} : vector<32x32xf32> to vector<16x32xf32>
    %c0_34 = arith.constant 0 : index
    %c64 = arith.constant 64 : index
    %103 = vector.load %arg15[%c0_34, %c64] : memref<32x128xf32, #tpu.memory_space<vmem>>, vector<16x32xf32>
    tpu.vector_store %arg15[%c0_34, %c64], %102 {strides = array<i32>} : memref<32x128xf32, #tpu.memory_space<vmem>>, vector<16x32xf32>,
    %104 = vector.extract_strided_slice %101 {offsets = [16, 0], sizes = [16, 32], strides = [1, 1]} : vector<32x32xf32> to vector<16x32xf32>
    %c0_35 = arith.constant 0 : index
    %c96 = arith.constant 96 : index
    %105 = vector.load %arg15[%c0_35, %c96] : memref<32x128xf32, #tpu.memory_space<vmem>>, vector<16x32xf32>
    tpu.vector_store %arg15[%c0_35, %c96], %104 {strides = array<i32>} : memref<32x128xf32, #tpu.memory_space<vmem>>, vector<16x32xf32>,
    %106 = vector.extract_strided_slice %30 {offsets = [16, 0], sizes = [16, 32], strides = [1, 1]} : vector<32x128xbf16> to vector<16x32xbf16>
    %107 = vector.extract_strided_slice %30 {offsets = [16, 32], sizes = [16, 32], strides = [1, 1]} : vector<32x128xbf16> to vector<16x32xbf16>
    %108 = tpu.concatenate %106, %107 in 0 : vector<16x32xbf16>, vector<16x32xbf16> -> vector<32x32xbf16>
    %109 = vector.extract_strided_slice %32 {offsets = [16, 0], sizes = [16, 32], strides = [1, 1]} : vector<32x64xbf16> to vector<16x32xbf16>
    %110 = vector.extract_strided_slice %34 {offsets = [16, 0], sizes = [16, 32], strides = [1, 1]} : vector<32x64xbf16> to vector<16x32xbf16>
    %cst_36 = arith.constant dense<0.000000e+00> : vector<32x16xf32>
    %111 = tpu.matmul %108, %109, %cst_36 {dimension_numbers = #tpu.dot_dimension_numbers<[1], [1], [0], [0], [0, 0, 1, 0], [], []>} : vector<32x32xbf16>, vector<16x32xbf16>, vector<32x16xf32> -> vector<32x16xf32>
    %cst_37 = arith.constant 0.176776692 : f32
    %112 = vector.broadcast %cst_37 : f32 to vector<32x16xf32>
    %113 = arith.mulf %111, %112 : vector<32x16xf32>
    %cst_38 = arith.constant -1.000000e+30 : f32
    %114 = vector.broadcast %cst_38 : f32 to vector<32x16xf32>
    %115 = arith.select %53, %113, %114 : vector<32x16xi1>, vector<32x16xf32>
    %cst_39 = arith.constant dense<0xFF800000> : vector<32xf32>
    %116 = vector.multi_reduction <maximumf>, %115, %cst_39 [1] : vector<32x16xf32> to vector<32xf32>
    %117 = vector.shape_cast %116 : vector<32xf32> to vector<32x1xf32>
    %118 = vector.broadcast %117 : vector<32x1xf32> to vector<32x16xf32>
    %119 = arith.subf %115, %118 : vector<32x16xf32>
    %120 = math.exp %119 : vector<32x16xf32>
    %cst_40 = arith.constant dense<0.000000e+00> : vector<32xf32>
    %121 = vector.multi_reduction <add>, %120, %cst_40 [1] : vector<32x16xf32> to vector<32xf32>
    %122 = vector.shape_cast %121 : vector<32xf32> to vector<32x1xf32>
    %123 = arith.truncf %120 : vector<32x16xf32> to vector<32x16xbf16>
    %cst_41 = arith.constant dense<0.000000e+00> : vector<32x32xf32>
    %124 = tpu.matmul %123, %110, %cst_41 {dimension_numbers = #tpu.dot_dimension_numbers<[1], [0], [0], [1], [0, 0, 1, 1], [], []>} : vector<32x16xbf16>, vector<16x32xbf16>, vector<32x32xf32> -> vector<32x32xf32>
    %125 = tpu.reciprocal %122 {approx = true} : vector<32x1xf32> -> vector<32x1xf32>
    %126 = vector.broadcast %125 : vector<32x1xf32> to vector<32x32xf32>
    %127 = arith.mulf %124, %126 : vector<32x32xf32>
    %128 = vector.extract_strided_slice %127 {offsets = [0, 0], sizes = [16, 32], strides = [1, 1]} : vector<32x32xf32> to vector<16x32xf32>
    %c16 = arith.constant 16 : index
    %c0_42 = arith.constant 0 : index
    %129 = vector.load %arg15[%c16, %c0_42] : memref<32x128xf32, #tpu.memory_space<vmem>>, vector<16x32xf32>
    tpu.vector_store %arg15[%c16, %c0_42], %128 {strides = array<i32>} : memref<32x128xf32, #tpu.memory_space<vmem>>, vector<16x32xf32>,
    %130 = vector.extract_strided_slice %127 {offsets = [16, 0], sizes = [16, 32], strides = [1, 1]} : vector<32x32xf32> to vector<16x32xf32>
    %c16_43 = arith.constant 16 : index
    %c32_44 = arith.constant 32 : index
    %131 = vector.load %arg15[%c16_43, %c32_44] : memref<32x128xf32, #tpu.memory_space<vmem>>, vector<16x32xf32>
    tpu.vector_store %arg15[%c16_43, %c32_44], %130 {strides = array<i32>} : memref<32x128xf32, #tpu.memory_space<vmem>>, vector<16x32xf32>,
    %132 = vector.extract_strided_slice %30 {offsets = [16, 64], sizes = [16, 32], strides = [1, 1]} : vector<32x128xbf16> to vector<16x32xbf16>
    %133 = vector.extract_strided_slice %30 {offsets = [16, 96], sizes = [16, 32], strides = [1, 1]} : vector<32x128xbf16> to vector<16x32xbf16>
    %134 = tpu.concatenate %132, %133 in 0 : vector<16x32xbf16>, vector<16x32xbf16> -> vector<32x32xbf16>
    %135 = vector.extract_strided_slice %32 {offsets = [16, 32], sizes = [16, 32], strides = [1, 1]} : vector<32x64xbf16> to vector<16x32xbf16>
    %136 = vector.extract_strided_slice %34 {offsets = [16, 32], sizes = [16, 32], strides = [1, 1]} : vector<32x64xbf16> to vector<16x32xbf16>
    %cst_45 = arith.constant dense<0.000000e+00> : vector<32x16xf32>
    %137 = tpu.matmul %134, %135, %cst_45 {dimension_numbers = #tpu.dot_dimension_numbers<[1], [1], [0], [0], [0, 0, 1, 0], [], []>} : vector<32x32xbf16>, vector<16x32xbf16>, vector<32x16xf32> -> vector<32x16xf32>
    %cst_46 = arith.constant 0.176776692 : f32
    %138 = vector.broadcast %cst_46 : f32 to vector<32x16xf32>
    %139 = arith.mulf %137, %138 : vector<32x16xf32>
    %cst_47 = arith.constant -1.000000e+30 : f32
    %140 = vector.broadcast %cst_47 : f32 to vector<32x16xf32>
    %141 = arith.select %53, %139, %140 : vector<32x16xi1>, vector<32x16xf32>
    %cst_48 = arith.constant dense<0xFF800000> : vector<32xf32>
    %142 = vector.multi_reduction <maximumf>, %141, %cst_48 [1] : vector<32x16xf32> to vector<32xf32>
    %143 = vector.shape_cast %142 : vector<32xf32> to vector<32x1xf32>
    %144 = vector.broadcast %143 : vector<32x1xf32> to vector<32x16xf32>
    %145 = arith.subf %141, %144 : vector<32x16xf32>
    %146 = math.exp %145 : vector<32x16xf32>
    %cst_49 = arith.constant dense<0.000000e+00> : vector<32xf32>
    %147 = vector.multi_reduction <add>, %146, %cst_49 [1] : vector<32x16xf32> to vector<32xf32>
    %148 = vector.shape_cast %147 : vector<32xf32> to vector<32x1xf32>
    %149 = arith.truncf %146 : vector<32x16xf32> to vector<32x16xbf16>
    %cst_50 = arith.constant dense<0.000000e+00> : vector<32x32xf32>
    %150 = tpu.matmul %149, %136, %cst_50 {dimension_numbers = #tpu.dot_dimension_numbers<[1], [0], [0], [1], [0, 0, 1, 1], [], []>} : vector<32x16xbf16>, vector<16x32xbf16>, vector<32x32xf32> -> vector<32x32xf32>
    %151 = tpu.reciprocal %148 {approx = true} : vector<32x1xf32> -> vector<32x1xf32>
    %152 = vector.broadcast %151 : vector<32x1xf32> to vector<32x32xf32>
    %153 = arith.mulf %150, %152 : vector<32x32xf32>
    %154 = vector.extract_strided_slice %153 {offsets = [0, 0], sizes = [16, 32], strides = [1, 1]} : vector<32x32xf32> to vector<16x32xf32>
    %c16_51 = arith.constant 16 : index
    %c64_52 = arith.constant 64 : index
    %155 = vector.load %arg15[%c16_51, %c64_52] : memref<32x128xf32, #tpu.memory_space<vmem>>, vector<16x32xf32>
    tpu.vector_store %arg15[%c16_51, %c64_52], %154 {strides = array<i32>} : memref<32x128xf32, #tpu.memory_space<vmem>>, vector<16x32xf32>,
    %156 = vector.extract_strided_slice %153 {offsets = [16, 0], sizes = [16, 32], strides = [1, 1]} : vector<32x32xf32> to vector<16x32xf32>
    %c16_53 = arith.constant 16 : index
    %c96_54 = arith.constant 96 : index
    %157 = vector.load %arg15[%c16_53, %c96_54] : memref<32x128xf32, #tpu.memory_space<vmem>>, vector<16x32xf32>
    tpu.vector_store %arg15[%c16_53, %c96_54], %156 {strides = array<i32>} : memref<32x128xf32, #tpu.memory_space<vmem>>, vector<16x32xf32>,
    %c0_55 = arith.constant 0 : index
    %c0_56 = arith.constant 0 : index
    %158 = vector.load %arg15[%c0_55, %c0_56] : memref<32x128xf32, #tpu.memory_space<vmem>>, vector<32x128xf32>
    %159 = arith.truncf %158 : vector<32x128xf32> to vector<32x128xbf16>
    %c0_57 = arith.constant 0 : index
    %c0_58 = arith.constant 0 : index
    %c0_59 = arith.constant 0 : index
    %160 = vector.load %arg7[%c0_57, %c0_58, %c0_59] : memref<1x128x128xbf16, #tpu.memory_space<vmem>>, vector<1x128x128xbf16>
    %161 = vector.shape_cast %160 : vector<1x128x128xbf16> to vector<128x128xbf16>
    %cst_60 = arith.constant dense<0.000000e+00> : vector<32x128xf32>
    %162 = tpu.matmul %159, %161, %cst_60 {dimension_numbers = #tpu.dot_dimension_numbers<[1], [0], [0], [1], [0, 0, 1, 1], [], []>} : vector<32x128xbf16>, vector<128x128xbf16>, vector<32x128xf32> -> vector<32x128xf32>
    %163 = arith.addf %3, %162 : vector<32x128xf32>
    %164 = arith.mulf %163, %163 : vector<32x128xf32>
    %cst_61 = arith.constant dense<0.000000e+00> : vector<32xf32>
    %165 = vector.multi_reduction <add>, %164, %cst_61 [1] : vector<32x128xf32> to vector<32xf32>
    %166 = vector.shape_cast %165 : vector<32xf32> to vector<32x1xf32>
    %cst_62 = arith.constant 1.280000e+02 : f32
    %167 = vector.broadcast %cst_62 : f32 to vector<32x1xf32>
    %168 = arith.divf %166, %167 : vector<32x1xf32>
    %cst_63 = arith.constant 9.99999974E-6 : f32
    %169 = vector.broadcast %cst_63 : f32 to vector<32x1xf32>
    %170 = arith.addf %168, %169 : vector<32x1xf32>
    %171 = math.rsqrt %170 : vector<32x1xf32>
    %172 = vector.broadcast %171 : vector<32x1xf32> to vector<32x128xf32>
    %173 = arith.mulf %163, %172 : vector<32x128xf32>
    %c0_64 = arith.constant 0 : index
    %c0_65 = arith.constant 0 : index
    %c0_66 = arith.constant 0 : index
    %174 = vector.load %arg8[%c0_64, %c0_65, %c0_66] : memref<1x1x128xf32, #tpu.memory_space<vmem>>, vector<1x1x128xf32>
    %175 = vector.shape_cast %174 : vector<1x1x128xf32> to vector<1x128xf32>
    %176 = vector.broadcast %175 : vector<1x128xf32> to vector<32x128xf32>
    %177 = arith.mulf %173, %176 : vector<32x128xf32>
    %178 = arith.truncf %177 : vector<32x128xf32> to vector<32x128xbf16>
    %c0_67 = arith.constant 0 : index
    %c0_68 = arith.constant 0 : index
    %c0_69 = arith.constant 0 : index
    %179 = vector.load %arg9[%c0_67, %c0_68, %c0_69] : memref<1x128x768xbf16, #tpu.memory_space<vmem>>, vector<1x128x768xbf16>
    %180 = vector.shape_cast %179 : vector<1x128x768xbf16> to vector<128x768xbf16>
    %cst_70 = arith.constant dense<0.000000e+00> : vector<32x768xf32>
    %181 = tpu.matmul %178, %180, %cst_70 {dimension_numbers = #tpu.dot_dimension_numbers<[1], [0], [0], [1], [0, 0, 1, 1], [], []>} : vector<32x128xbf16>, vector<128x768xbf16>, vector<32x768xf32> -> vector<32x768xf32>
    %182 = vector.extract_strided_slice %181 {offsets = [0, 0], sizes = [32, 384], strides = [1, 1]} : vector<32x768xf32> to vector<32x384xf32>
    %183 = vector.extract_strided_slice %181 {offsets = [0, 384], sizes = [32, 384], strides = [1, 1]} : vector<32x768xf32> to vector<32x384xf32>
    %184 = arith.negf %182 : vector<32x384xf32>
    %185 = math.exp %184 : vector<32x384xf32>
    %cst_71 = arith.constant 1.000000e+00 : f32
    %186 = vector.broadcast %cst_71 : f32 to vector<32x384xf32>
    %187 = arith.addf %186, %185 : vector<32x384xf32>
    %188 = arith.divf %186, %187 : vector<32x384xf32>
    %189 = arith.mulf %182, %188 : vector<32x384xf32>
    %190 = arith.mulf %189, %183 : vector<32x384xf32>
    %191 = arith.truncf %190 : vector<32x384xf32> to vector<32x384xbf16>
    %c0_72 = arith.constant 0 : index
    %c0_73 = arith.constant 0 : index
    %c0_74 = arith.constant 0 : index
    %192 = vector.load %arg10[%c0_72, %c0_73, %c0_74] : memref<1x384x128xbf16, #tpu.memory_space<vmem>>, vector<1x384x128xbf16>
    %193 = vector.shape_cast %192 : vector<1x384x128xbf16> to vector<384x128xbf16>
    %cst_75 = arith.constant dense<0.000000e+00> : vector<32x128xf32>
    %194 = tpu.matmul %191, %193, %cst_75 {dimension_numbers = #tpu.dot_dimension_numbers<[1], [0], [0], [1], [0, 0, 1, 1], [], []>} : vector<32x384xbf16>, vector<384x128xbf16>, vector<32x128xf32> -> vector<32x128xf32>
    %195 = arith.addf %163, %194 : vector<32x128xf32>
    %c0_76 = arith.constant 0 : index
    %c0_77 = arith.constant 0 : index
    %196 = vector.load %arg14[%c0_76, %c0_77] : memref<32x128xf32, #tpu.memory_space<vmem>>, vector<32x128xf32>
    tpu.vector_store %arg14[%c0_76, %c0_77], %195 {strides = array<i32>} : memref<32x128xf32, #tpu.memory_space<vmem>>, vector<32x128xf32>,
    %c1_i32_78 = arith.constant 1 : i32
    %197 = arith.cmpi eq, %arg1, %c1_i32_78 : i32
    %198 = arith.extui %197 : i1 to i32
    %c0_i32_79 = arith.constant 0 : i32
    %199 = arith.cmpi ne, %198, %c0_i32_79 : i32
    scf.if %199 {
      %200 = arith.mulf %195, %195 : vector<32x128xf32>
      %cst_80 = arith.constant dense<0.000000e+00> : vector<32xf32>
      %201 = vector.multi_reduction <add>, %200, %cst_80 [1] : vector<32x128xf32> to vector<32xf32>
      %202 = vector.shape_cast %201 : vector<32xf32> to vector<32x1xf32>
      %cst_81 = arith.constant 1.280000e+02 : f32
      %203 = vector.broadcast %cst_81 : f32 to vector<32x1xf32>
      %204 = arith.divf %202, %203 : vector<32x1xf32>
      %cst_82 = arith.constant 9.99999974E-6 : f32
      %205 = vector.broadcast %cst_82 : f32 to vector<32x1xf32>
      %206 = arith.addf %204, %205 : vector<32x1xf32>
      %207 = math.rsqrt %206 : vector<32x1xf32>
      %208 = vector.broadcast %207 : vector<32x1xf32> to vector<32x128xf32>
      %209 = arith.mulf %195, %208 : vector<32x128xf32>
      %c0_83 = arith.constant 0 : index
      %c0_84 = arith.constant 0 : index
      %210 = vector.load %arg11[%c0_83, %c0_84] : memref<1x128xf32, #tpu.memory_space<vmem>>, vector<1x128xf32>
      %211 = vector.broadcast %210 : vector<1x128xf32> to vector<32x128xf32>
      %212 = arith.mulf %209, %211 : vector<32x128xf32>
      %213 = arith.truncf %212 : vector<32x128xf32> to vector<32x128xbf16>
      %c0_85 = arith.constant 0 : index
      %c0_86 = arith.constant 0 : index
      %214 = vector.load %arg12[%c0_85, %c0_86] : memref<128x256xbf16, #tpu.memory_space<vmem>>, vector<128x256xbf16>
      %cst_87 = arith.constant dense<0.000000e+00> : vector<32x256xf32>
      %215 = tpu.matmul %213, %214, %cst_87 {dimension_numbers = #tpu.dot_dimension_numbers<[1], [0], [0], [1], [0, 0, 1, 1], [], []>} : vector<32x128xbf16>, vector<128x256xbf16>, vector<32x256xf32> -> vector<32x256xf32>
      %c0_88 = arith.constant 0 : index
      %c0_89 = arith.constant 0 : index
      %216 = vector.load %arg13[%c0_88, %c0_89] : memref<32x256xf32, #tpu.memory_space<vmem>>, vector<32x256xf32>
      tpu.vector_store %arg13[%c0_88, %c0_89], %215 {strides = array<i32>} : memref<32x256xf32, #tpu.memory_space<vmem>>, vector<32x256xf32>,
    } else {
    }
    return
  }
  func.func @transform_0(%arg0: i32, %arg1: i32) -> (i32, i32) {
    %c0_i32 = arith.constant 0 : i32
    %c0_i32_0 = arith.constant 0 : i32
    return %arg0, %c0_i32 : i32, i32
  }
  func.func @transform_1(%arg0: i32, %arg1: i32) -> (i32, i32) {
    %c0_i32 = arith.constant 0 : i32
    %c0_i32_0 = arith.constant 0 : i32
    return %arg0, %c0_i32 : i32, i32
  }
  func.func @transform_2(%arg0: i32, %arg1: i32) -> (i32, i32) {
    %c0_i32 = arith.constant 0 : i32
    %c0_i32_0 = arith.constant 0 : i32
    return %arg0, %c0_i32 : i32, i32
  }
  func.func @transform_3(%arg0: i32, %arg1: i32) -> (i32, i32, i32) {
    %c0_i32 = arith.constant 0 : i32
    %c0_i32_0 = arith.constant 0 : i32
    %c0_i32_1 = arith.constant 0 : i32
    return %arg1, %c0_i32, %c0_i32_0 : i32, i32, i32
  }
  func.func @transform_4(%arg0: i32, %arg1: i32) -> (i32, i32, i32) {
    %c0_i32 = arith.constant 0 : i32
    %c0_i32_0 = arith.constant 0 : i32
    %c0_i32_1 = arith.constant 0 : i32
    return %arg1, %c0_i32, %c0_i32_0 : i32, i32, i32
  }
  func.func @transform_5(%arg0: i32, %arg1: i32) -> (i32, i32, i32) {
    %c0_i32 = arith.constant 0 : i32
    %c0_i32_0 = arith.constant 0 : i32
    %c0_i32_1 = arith.constant 0 : i32
    return %arg1, %c0_i32, %c0_i32_0 : i32, i32, i32
  }
  func.func @transform_6(%arg0: i32, %arg1: i32) -> (i32, i32, i32) {
    %c0_i32 = arith.constant 0 : i32
    %c0_i32_0 = arith.constant 0 : i32
    %c0_i32_1 = arith.constant 0 : i32
    return %arg1, %c0_i32, %c0_i32_0 : i32, i32, i32
  }
  func.func @transform_7(%arg0: i32, %arg1: i32) -> (i32, i32, i32) {
    %c0_i32 = arith.constant 0 : i32
    %c0_i32_0 = arith.constant 0 : i32
    %c0_i32_1 = arith.constant 0 : i32
    return %arg1, %c0_i32, %c0_i32_0 : i32, i32, i32
  }
  func.func @transform_8(%arg0: i32, %arg1: i32) -> (i32, i32, i32) {
    %c0_i32 = arith.constant 0 : i32
    %c0_i32_0 = arith.constant 0 : i32
    %c0_i32_1 = arith.constant 0 : i32
    return %arg1, %c0_i32, %c0_i32_0 : i32, i32, i32
  }
  func.func @transform_9(%arg0: i32, %arg1: i32) -> (i32, i32) {
    %c0_i32 = arith.constant 0 : i32
    %c0_i32_0 = arith.constant 0 : i32
    %c0_i32_1 = arith.constant 0 : i32
    return %c0_i32, %c0_i32_0 : i32, i32
  }
  func.func @transform_10(%arg0: i32, %arg1: i32) -> (i32, i32) {
    %c0_i32 = arith.constant 0 : i32
    %c0_i32_0 = arith.constant 0 : i32
    %c0_i32_1 = arith.constant 0 : i32
    return %c0_i32, %c0_i32_0 : i32, i32
  }
  func.func @transform_11(%arg0: i32, %arg1: i32) -> (i32, i32) {
    %c0_i32 = arith.constant 0 : i32
    %c0_i32_0 = arith.constant 0 : i32
    return %arg0, %c0_i32 : i32, i32
  }
}

</mosaic_0001>

<bundles_post_ra>
// kernel: llama_forward.1
= control target key start
LH: loop header
LB: loop body
LE: loop exit
PB: predicated region body
PF: predicated region fallthrough
CT: control target
= control target key end

     0   :  { %s5135_s0 = inlined_call_operand.vmem [shape: f32[32,128], index: 0, kind: input, shape index: {}]   ;;  %s5136_s1 = inlined_call_operand.vmem [shape: f32[32,192], index: 1, kind: input, shape index: {}]   ;;  %s5137_s2 = inlined_call_operand.vmem [shape: f32[32,192], index: 2, kind: input, shape index: {}]   ;;  %s5138_s3 = inlined_call_operand.hbm [shape: f32[2,1,128], index: 3, kind: input, shape index: {}]   ;;  %s5139_s4 = inlined_call_operand.vmem [shape: bf16[2,128,448], index: 4, kind: input, shape index: {}]   ;;  %s5140_s5 = inlined_call_operand.hbm [shape: bf16[2,128,128], index: 5, kind: input, shape index: {}]   ;;  %s5141_s6 = inlined_call_operand.hbm [shape: f32[2,1,128], index: 6, kind: input, shape index: {}]   ;;  %s5142_s7 = inlined_call_operand.vmem [shape: bf16[2,128,768], index: 7, kind: input, shape index: {}]   ;;  %s5143_s8 = inlined_call_operand.vmem [shape: bf16[2,384,128], index: 8, kind: input, shape index: {}]   ;;  %s5144_s9 = inlined_call_operand.hbm [shape: f32[1,128], index: 9, kind: input, shape index: {}]   ;;  %s5145_s10 = inlined_call_operand.hbm [shape: bf16[128,256], index: 10, kind: input, shape index: {}]   ;;  %s5146_s11 = inlined_call_operand.hbm [shape: f32[32,256], index: 11, kind: output, shape index: {}]  }
   0x1   :  { %5154 = sst [smem:[#allocation21_spill]] %s5135_s0 }
   0x2   :  { %5155 = sst [smem:[#allocation22_spill]] %s5136_s1 }
   0x3   :  { %5156 = sst [smem:[#allocation23_spill]] %s5137_s2 }
   0x4   :  { %5157 = sst [smem:[#allocation24_spill]] %s5140_s5 }
   0x5   :  { %5158 = sst [smem:[#allocation25_spill]] %s5144_s9 }
   0x6   :  { %5159 = sst [smem:[#allocation26_spill]] %s5146_s11 }
   0x7   :  { %16 = vsyncpa [#allocation5], 0 }
   0x8   :  { %18 = vsyncpa [#allocation5 + $0x1], 0 }
   0x9   :  { %19 = vsyncpa [#allocation8], 0 }
   0xa   :  { %21 = vsyncpa [#allocation8 + $0x1], 0 }
   0xb   :  { %22 = vsyncpa [#allocation11], 0 }
   0xc   :  { %23 = vsyncpa [#allocation6], 0  ;;  %s4383_s17 = smov 0   ;;  %s4385_s18 = smov 0  }
   0xd   :  { %s4387_s19 = smov 0   ;;  %s4389_s20 = smov 0  }
   0xe   :  { %s4391_s21 = smov 0   ;;  %s4393_s22 = smov 0  }
   0xf LB: > { %5160 = sst [smem:[#allocation18_spill]] %s4304_s22  ;;  %s4412_s23 = sadd.s32 4294967295, %s4304_s22   ;;  %s4304_s22 = sphi %s4393_s22, %s29_s22   ;;  %s4300_s21 = sphi %s4391_s21, %s5193_s21   ;;  %s4296_s20 = sphi %s4389_s20, %s5192_s20   ;;  %s4292_s19 = sphi %s4387_s19, %s5191_s19   ;;  %s4288_s18 = sphi %s4385_s18, %s5190_s18   ;;  %s4284_s17 = sphi %s4383_s17, %s5189_s17  }
  0x10   : > { %p133_p0 = scmp.ne.s32.totalorder %s4292_s19, %s4288_s18  ;;  %p134_p1 = scmp.eq.s32.totalorder %s4304_s22, 0 }
  0x11   : > { %p139_p2 = scmp.ne.s32.totalorder %s4288_s18, %s4284_s17  ;;  %p5147_p3 = scmp.eq.s32.totalorder %s4412_s23, 0 }
  0x12   : > { %p135_p4 = por %p134_p1, %p133_p0  ;;  %p3293_p5 = scmp.ge.s32.totalorder %s4304_s22, 1 }
  0x13   : > { %p4423_p6 = por %p5147_p3, %p139_p2  ;;  %p348_p7 = scmp.lt.s32.totalorder %s4304_s22, 3 }
  0x14   : > { %s4306_s27 = smov [#allocation10]   ;;  %p3699_p10 = scmp.lt.s32.totalorder %s4304_s22, 2 }
  0x15   : > { %p4428_p8 = pnand %p3293_p5, %p348_p7  ;;  %s390_s28 = sshll.u32 %s4306_s27, 4  ;;  %s391_s28 = int_to_ptr.vmem [resolvable:$true] %s390_s28 }
  0x16   : > { %s4436_s29 = sand.u32 1, %s4292_s19   ;;  %p4444_p12 = pnand %p3699_p10, %p135_p4 }
  0x17   : > { %p3680_p9 = pneg %p4428_p8  ;;  %s439_s13 = sand.u32 1, %s4304_s22  }
  0x18   : > { %s4093_s14 = scalar_lea.vmem %s391_s28, 16  ;;  %s4100_s15 = scalar_lea.vmem %s391_s28, 32 }
  0x19   : > { %p4440_p11 = pnand %p3680_p9, %p5147_p3  ;;  %p4094_p0 = scmp.ne.s32.totalorder %s391_s28, %s4093_s14 }
  0x1a   : > { %p4101_p5 = scmp.lt.s32.totalorder %s391_s28, %s391_s28  ;;  %p4102_p7 = scmp.lt.s32.totalorder %s4100_s15, %s4093_s14 }
  0x1b   : > { %p4084_p13 = pneg %p4440_p11 }
  0x1c   : > { %p4103_p9 = por %p4102_p7, %p4101_p5 }
  0x1d   : > { %p4096_p1 = pnand %p4094_p0, %p4084_p13 }
  0x1f   : > { %p4097_p2 = pneg %p4096_p1 }
  0x21   : > { %p4104_p3 = pnand %p4103_p9, %p4097_p2 }
  0x23   : > { %4107 = shalt.err (!%p4104_p3)
}
  0x24   : > { %s5165_s9 = sld [smem:[#allocation25_spill]]  ;;  %s38_s27 = sadd.s32 1, %s4300_s21 }
  0x25   : > { %p39_p4 = scmp.ge.s32.totalorder %s38_s27, 2  ;;  %s3301_s14 = sshll.u32 %s4436_s29, 6 }
  0x26   : > { %s3478_s15 = sshll.u32 %s4300_s21, 10  ;;  %s5167_s5 = sld [smem:[#allocation24_spill]] }
  0x27   : > { %s5195_s27 = smov (%p39_p4, %s38_s27), 0  ;;  %s443_s17 = scalar_lea.vmem [#allocation7], %s3301_s14 }
  0x28   : > { %5166 = sst [smem:[#allocation19_spill]] %s5195_s27  ;;  %s450_s11 = sshll.u32 %s443_s17, 4  ;;  %s451_s11 = int_to_ptr.vmem [resolvable:$true] %s450_s11 }
  0x29   : > { %s123_s2 = ssub.s32 %s4300_s21, %s5195_s27  ;;  %s5168_s1 = sadd.s32 1, %s4292_s19 }
  0x2a   : > { %3683 = dma.hbm_to_vmem [thread:$0]  (!%p4440_p11), %s5165_s9, 16, %s391_s28, [#allocation11]  }
  0x2b   : > { %p124_p3 = scmp.eq.s32.totalorder %s123_s2, 0  ;;  %s4474_s28 = scalar_lea.sflag [#allocation8], %s439_s13 }
  0x2c   : > { %s449_s16 = scalar_lea.hbm %s5167_s5, %s3478_s15  ;;  %p5152_p10 = pneg %p4444_p12 }
  0x2d   : > { %s4472_s0 = scalar_select %p124_p3, %s4292_s19, %s5168_s1  }
  0x2e   : > { %s4121_s9 = scalar_lea.vmem %s451_s11, 1024  ;;  %s4307_s22 = smov [#allocation7]  }
  0x2f   : > { %5169 = sst [smem:[#allocation20_spill]] %s4472_s0  ;;  %p4122_p0 = scmp.ne.s32.totalorder %s451_s11, %s4121_s9 }
  0x30   : > { %s4126_s24 = sshll.u32 %s4307_s22, 4  ;;  %s4127_s24 = int_to_ptr.vmem [resolvable:$false] %s4126_s24 }
  0x31   : > { %p4124_p1 = pnand %p4122_p0, %p5152_p10  ;;  %s4128_s14 = scalar_lea.vmem %s4127_s24, 2048 }
  0x32   : > { %p4129_p5 = scmp.lt.s32.totalorder %s451_s11, %s4127_s24  ;;  %p4130_p7 = scmp.lt.s32.totalorder %s4128_s14, %s4121_s9 }
  0x33   : > { %p4125_p2 = pneg %p4124_p1 }
  0x34   : > { %p4131_p9 = por %p4130_p7, %p4129_p5 }
  0x36   : > { %p4132_p4 = pnand %p4131_p9, %p4125_p2 }
  0x38   : > { %4135 = shalt.err (!%p4132_p4)
}
  0x39   : > { %s4308_s1 = smov 64   ;;  %s4309_s2 = smov 4  }
  0x3a   : > { %3693 = dma.hbm_to_vmem [thread:$0]  (!%p4444_p12), %s449_s16, 1024, %s451_s11, %s4474_s28, %s4308_s1, %s4308_s1, %s4309_s2  }
  0x3b   : > { %s4310_s13 = smov [#allocation12]  }
  0x3c   : > { %s400_s15 = sshll.u32 %s4310_s13, 4  ;;  %s401_s15 = int_to_ptr.vmem [resolvable:$true] %s400_s15 }
  0x3d   : > { %s4147_s17 = scalar_lea.vmem %s401_s15, 2048  ;;  %p4155_p10 = scmp.lt.s32.totalorder %s401_s15, %s401_s15 }
  0x3e   : > { %p4148_p3 = scmp.ne.s32.totalorder %s401_s15, %s4147_s17  ;;  %p4156_p5 = scmp.lt.s32.totalorder %s4147_s17, %s4147_s17 }
  0x40   : > { %p4150_p0 = pnand %p4148_p3, %p4084_p13  ;;  %p4157_p2 = por %p4156_p5, %p4155_p10 }
  0x42   : > { %p4151_p1 = pneg %p4150_p0 }
  0x44   : > { %p4158_p7 = pnand %p4157_p2, %p4151_p1 }
  0x46   : > { %4161 = shalt.err (!%p4158_p7)
}
  0x47   : > { %s4311_s9 = smov 128   ;;  %s4312_s11 = smov 8  }
  0x48   : > { %3686 = dma.hbm_to_vmem [thread:$0]  (!%p4440_p11), %s5145_s10, 2048, %s401_s15, [#allocation11], %s4311_s9, %s4311_s9, %s4312_s11  }
  0x49   : > { %s3300_s24 = sshll.u32 %s4300_s21, 4  ;;  %s417_s14 = scalar_lea.vmem [#allocation4], %s4436_s29 }
  0x4a   : > { %s424_s1 = sshll.u32 %s417_s14, 4  ;;  %s422_s17 = scalar_lea.hbm %s5138_s3, %s3300_s24  ;;  %s425_s1 = int_to_ptr.vmem [resolvable:$true] %s424_s1 }
  0x4b   : > { %s415_s5 = scalar_lea.sflag [#allocation5], %s4436_s29  ;;  %s4175_s27 = scalar_lea.vmem %s425_s1, 16 }
  0x4c   : > { %p4176_p13 = scmp.ne.s32.totalorder %s425_s1, %s4175_s27  ;;  %p5170_p10 = pneg %p4444_p12 }
  0x4d   : > { %s4313_s30 = smov [#allocation4]  }
  0x4e   : > { %p4178_p9 = pnand %p4176_p13, %p5170_p10  ;;  %s4180_s0 = sshll.u32 %s4313_s30, 4  ;;  %s4181_s0 = int_to_ptr.vmem [resolvable:$false] %s4180_s0 }
  0x4f   : > { %s4182_s16 = scalar_lea.vmem %s4181_s0, 32  ;;  %p4183_p11 = scmp.lt.s32.totalorder %s425_s1, %s4181_s0 }
  0x50   : > { %p4179_p4 = pneg %p4178_p9  ;;  %p4184_p3 = scmp.lt.s32.totalorder %s4182_s16, %s4175_s27 }
  0x52   : > { %p4185_p0 = por %p4184_p3, %p4183_p11 }
  0x54   : > { %p4186_p1 = pnand %p4185_p0, %p4179_p4 }
  0x56   : > { %4189 = shalt.err (!%p4186_p1)
}
  0x57   : > { %3690 = dma.hbm_to_vmem [thread:$0]  (!%p4444_p12), %s422_s17, 16, %s425_s1, %s415_s5  }
  0x58   : > { %s468_s11 = scalar_lea.hbm %s5141_s6, %s3300_s24  ;;  %s463_s22 = scalar_lea.vmem [#allocation9], %s4436_s29 }
  0x59   : > { %s470_s14 = sshll.u32 %s463_s22, 4  ;;  %p5171_p2 = pmov %p5170_p10  ;;  %s471_s14 = int_to_ptr.vmem [resolvable:$true] %s470_s14 }
  0x5a   : > { %s4203_s2 = scalar_lea.vmem %s471_s14, 16  ;;  %s4314_s0 = smov [#allocation9]  }
  0x5b   : > { %p4204_p5 = scmp.ne.s32.totalorder %s471_s14, %s4203_s2  ;;  %s4208_s27 = sshll.u32 %s4314_s0, 4  ;;  %s4209_s27 = int_to_ptr.vmem [resolvable:$false] %s4208_s27 }
  0x5c   : > { %s4210_s13 = scalar_lea.vmem %s4209_s27, 32  ;;  %p4211_p10 = scmp.lt.s32.totalorder %s471_s14, %s4209_s27 }
  0x5d   : > { %p4206_p7 = pnand %p4204_p5, %p5171_p2  ;;  %p4212_p9 = scmp.lt.s32.totalorder %s4210_s13, %s4203_s2 }
  0x5f   : > { %p4207_p13 = pneg %p4206_p7  ;;  %p4213_p4 = por %p4212_p9, %p4211_p10 }
  0x61   : > { %p4214_p11 = pnand %p4213_p4, %p4207_p13 }
  0x63   : > { %4217 = shalt.err (!%p4214_p11)
}
  0x64   : > { %3696 = dma.hbm_to_vmem [thread:$0]  (!%p4444_p12), %s468_s11, 16, %s471_s14, %s4474_s28  }
  0x65   : > { %495 = sbr.rel (%p4428_p8) target bundleno = 2702 (0xa8e), region = 64  ;;  %s4516_s5 = sand.u32 (!%p4428_p8), 1, %s4288_s18  }
  0x66   : > { %s498_s29 = scalar_lea.sflag (!%p4428_p8), [#allocation5], %s4516_s5  ;;  %s500_s24 = scalar_lea.vmem (!%p4428_p8), [#allocation4], %s4516_s5 }
  0x6a   : > { %4267 = dma.done.wait (%p4423_p6), %s498_s29, 16  }
  0x6b   : > { %4269 = vsyncadd (%p4423_p6), %s498_s29, 4294967280  ;;  %s505_s12 = sand.u32 1, %s4412_s23   ;;  %s3306_s28 = sshll.u32 %s4516_s5, 6 }
  0x6c   : > { %s506_s26 = scalar_lea.sflag [#allocation8], %s505_s12  ;;  %s4526_s1 = scalar_lea.vmem [#allocation7], %s3306_s28 }
  0x6d   : > { %4271 = dma.done.wait (%p4423_p6), %s506_s26, 1040  }
  0x6e   : > { %4273 = vsyncadd (%p4423_p6), %s506_s26, 4294966256  ;;  %s517_s17 = scalar_lea.vmem [#allocation9], %s4516_s5  ;;  %p5172_p8 = scmp.eq.s32.totalorder %s4412_s23, 0 }
  0x70   : > { %4275 = dma.done.wait (%p5172_p8), [#allocation11], 2064   ;;  %p5173_p12 = pmov %p5172_p8 }
  0x71   : > { %p619_p3 = scmp.lt.s32.totalorder %s4296_s20, 1  ;;  %p3313_p6 = scmp.ne.s32.totalorder %s4296_s20, 0 }
  0x72   : > { %4277 = vsyncadd (%p5173_p12), [#allocation11], 4294965232  ;;  %s5174_s26 = sld [smem:[#allocation21_spill]] (!%p3313_p6) }
  0x73   : > { %s620_s30 = scalar_select %p619_p3, %s4296_s20, 1 }
  0x74   : > { %639 = sbr.rel (%p3313_p6) target bundleno = 124 (0x7c), region = 88 }
  0x75   : > { %s3479_s16 = sshll.u32 %s620_s30, 8  ;;  %s3660_s15 = smul.u32 384, %s620_s30 }
  0x76   : > { %s4542_s22 = scalar_lea.vmem %s5139_s4, %s3479_s16  ;;  %s3661_s25 = smul.u32 192, %s620_s30 }
  0x77   : > { %s4547_s0 = scalar_lea.vmem %s5142_s7, %s3660_s15 }
  0x78   : > { %s4552_s29 = scalar_lea.vmem %s5143_s8, %s3661_s25 }
  0x79   : > { %v640_v0 = vld [vmem:[%s5174_s26] sm:$0xff]  ;;  %v641_v1 = vld [vmem:[%s5174_s26 + $0x8] sm:$0xff]  ;;  %v642_v2 = vld [vmem:[%s5174_s26 + $0x10] sm:$0xff] }
  0x7a   : > { %644 = vst [vmem:[#allocation2 + $0x10] sm:$0xff] %v640_v0  ;;  %645 = vst [vmem:[#allocation2] sm:$0xff] %v641_v1  ;;  %v643_v3 = vld [vmem:[%s5174_s26 + $0x18] sm:$0xff] }
  0x7b   : > { %646 = vst [vmem:[#allocation2 + $0x18] sm:$0xff] %v642_v2  ;;  %647 = vst [vmem:[#allocation2 + $0x8] sm:$0xff] %v643_v3 }
  0x7c PF: > { %v3766_v10 = vld [vmem:[%s4542_s22 + $0xe4] ss:$16 sps:$4 sm:$0xff]   ;;  %v3768_v13 = vld [vmem:[%s4542_s22 + $0xec] ss:$16 sps:$4 sm:$0xff]   ;;  %v3770_v14 = vld [vmem:[%s4542_s22 + $0xe0] ss:$16 sps:$4 sm:$0xff]  }
  0x7d   : > { %v3771_v15 = vld [vmem:[%s4542_s22 + $0xe8] ss:$16 sps:$4 sm:$0xff]   ;;  %886 = vmatprep.subr.bf16.mxu0 %v3766_v10  ;;  %939 = vmatprep.subr.bf16.mxu1 %v3768_v13  ;;  %v3772_v16 = vld [vmem:[%s4542_s22 + $0xc4] ss:$16 sps:$4 sm:$0xff]   ;;  %v3774_v17 = vld [vmem:[%s4542_s22 + $0xcc] ss:$16 sps:$4 sm:$0xff]  }
  0x7e   : > { %887 = vmatpush1.bf16.msra.mxu0 %v3770_v14  ;;  %940 = vmatpush1.bf16.msra.mxu1 %v3771_v15  ;;  %v3776_v18 = vld [vmem:[%s4542_s22 + $0xc0] ss:$16 sps:$4 sm:$0xff]   ;;  %v3777_v19 = vld [vmem:[%s4542_s22 + $0xc8] ss:$16 sps:$4 sm:$0xff]   ;;  %v3778_v20 = vld [vmem:[%s4542_s22 + $0xa4] ss:$16 sps:$4 sm:$0xff]  }
  0x7f   : > { %888 = vmatprep.subr.bf16.mxu0 %v3772_v16  ;;  %941 = vmatprep.subr.bf16.mxu1 %v3774_v17  ;;  %v3780_v21 = vld [vmem:[%s4542_s22 + $0xac] ss:$16 sps:$4 sm:$0xff]   ;;  %v3782_v22 = vld [vmem:[%s4542_s22 + $0xa0] ss:$16 sps:$4 sm:$0xff]   ;;  %v3783_v23 = vld [vmem:[%s4542_s22 + $0xa8] ss:$16 sps:$4 sm:$0xff]  }
  0x80   : > { %v3784_v24 = vld [vmem:[%s4542_s22 + $0x84] ss:$16 sps:$4 sm:$0xff]   ;;  %v3786_v25 = vld [vmem:[%s4542_s22 + $0x8c] ss:$16 sps:$4 sm:$0xff]   ;;  %v3788_v26 = vld [vmem:[%s4542_s22 + $0x80] ss:$16 sps:$4 sm:$0xff]  }
  0x81   : > { %v4567_v4 = vld [vmem:[#allocation2 + $0x10] sm:$0xff]  ;;  %v4569_v5 = vld [vmem:[#allocation2] sm:$0xff]  ;;  %v3789_v27 = vld [vmem:[%s4542_s22 + $0x88] ss:$16 sps:$4 sm:$0xff]   ;;  %v4315_v40 = vmov 0   ;;  %s5175_s14 = sld [smem:[#allocation22_spill]] }
  0x82   : > { %v4571_v6 = vld [vmem:[#allocation2 + $0x18] sm:$0xff]  ;;  %v652_v7 = vmul.f32 %v4567_v4, %v4567_v4  ;;  %v4577_v9 = vld [vmem:[#allocation2 + $0x8] sm:$0xff]  ;;  %v653_v11 = vmul.f32 %v4569_v5, %v4569_v5  ;;  %889 = vmatpush1.bf16.msra.mxu0 %v3776_v18  ;;  %942 = vmatpush1.bf16.msra.mxu1 %v3777_v19  ;;  %v3790_v28 = vld [vmem:[%s4542_s22 + $0x64] ss:$16 sps:$4 sm:$0xff]   ;;  %s5176_s13 = sld [smem:[#allocation23_spill]]  ;;  %vm1100_vm0 = vcmask 261120  }
  0x83   : > { %v654_v8 = vmul.f32 %v4571_v6, %v4571_v6  ;;  %v655_v12 = vmul.f32 %v4577_v9, %v4577_v9  ;;  %890 = vmatprep.subr.bf16.mxu0 %v3778_v20  ;;  %943 = vmatprep.subr.bf16.mxu1 %v3780_v21  ;;  %v3792_v29 = vld [vmem:[%s4542_s22 + $0x6c] ss:$16 sps:$4 sm:$0xff]   ;;  %v3794_v30 = vld [vmem:[%s4542_s22 + $0x60] ss:$16 sps:$4 sm:$0xff]   ;;  %v3795_v31 = vld [vmem:[%s4542_s22 + $0x68] ss:$16 sps:$4 sm:$0xff]  }
  0x84   : > { %656 = vadd.xlane.f32.xlu0 %v652_v7  ;;  %v3796_v32 = vld [vmem:[%s4542_s22 + $0x44] ss:$16 sps:$4 sm:$0xff]   ;;  %v3798_v33 = vld [vmem:[%s4542_s22 + $0x4c] ss:$16 sps:$4 sm:$0xff]   ;;  %v3800_v34 = vld [vmem:[%s4542_s22 + $0x40] ss:$16 sps:$4 sm:$0xff]   ;;  %918 = vmatprep.mubr.bf16.mxu0 %v4315_v40 }
  0x85   : > { %660 = vadd.xlane.f32.xlu1 %v654_v8  ;;  %v3801_v35 = vld [vmem:[%s4542_s22 + $0x48] ss:$16 sps:$4 sm:$0xff]   ;;  %v3802_v36 = vld [vmem:[%s4542_s22 + $0x24] ss:$16 sps:$4 sm:$0xff]   ;;  %v3804_v37 = vld [vmem:[%s4542_s22 + $0x2c] ss:$16 sps:$4 sm:$0xff]   ;;  %971 = vmatprep.mubr.bf16.mxu1 %v4315_v40 }
  0x86   : > { %891 = vmatpush1.bf16.msra.mxu0 %v3782_v22  ;;  %944 = vmatpush1.bf16.msra.mxu1 %v3783_v23  ;;  %v3806_v38 = vld [vmem:[%s4542_s22 + $0x20] ss:$16 sps:$4 sm:$0xff]   ;;  %v3807_v39 = vld [vmem:[%s4542_s22 + $0x28] ss:$16 sps:$4 sm:$0xff]   ;;  %v3808_v41 = vld [vmem:[%s4542_s22 + $0x4] ss:$16 sps:$4 sm:$0xff]  }
  0x87   : > { %892 = vmatprep.subr.bf16.mxu0 %v3784_v24  ;;  %945 = vmatprep.subr.bf16.mxu1 %v3786_v25  ;;  %v3810_v42 = vld [vmem:[%s4542_s22 + $0xc] ss:$16 sps:$4 sm:$0xff]   ;;  %v3812_v43 = vld [vmem:[%s4542_s22] ss:$16 sps:$4 sm:$0xff]   ;;  %v3813_v44 = vld [vmem:[%s4542_s22 + $0x8] ss:$16 sps:$4 sm:$0xff]  }
  0x88   : > { %658 = vadd.xlane.f32.xlu0 %v653_v11  ;;  %v3314_v61 = vld [vmem:[%s500_s24] ss:$0 sm:$0xff]  ;;  %v1009_v13 = vld [vmem:[%s5176_s13 + $0x8] sm:$0xff]  ;;  %v994_v18 = vld [vmem:[%s5175_s14 + $0x10] sm:$0xff]  ;;  %s4316_s24 = smov 96   ;;  %s4317_s11 = smov 64  }
  0x89   : > { %662 = vadd.xlane.f32.xlu1 %v655_v12  ;;  %v993_v12 = vld [vmem:[%s5175_s14 + $0x8] sm:$0xff]  ;;  %v1010_v19 = vld [vmem:[%s5176_s13 + $0x10] sm:$0xff]  ;;  %v995_v24 = vld [vmem:[%s5175_s14 + $0x18] sm:$0xff]  ;;  %vm1167_vm2 = vcmask 130048   ;;  %s4318_s15 = smov 32   ;;  %vm1283_vm6 = vcmask 523520  }
  0x8a   : > { %893 = vmatpush1.bf16.msra.mxu0 %v3788_v26  ;;  %946 = vmatpush1.bf16.msra.mxu1 %v3789_v27  ;;  %v1011_v25 = vld [vmem:[%s5176_s13 + $0x18] sm:$0xff]  ;;  %vm1471_vm7 = vcmask 785920   ;;  %vm1482_vm8 = vcmask 1048320   ;;  %p3456_p0 = scmp.ne.s32.totalorder %s4296_s20, 1 }
  0x8b   : > { %894 = vmatprep.subr.bf16.mxu0 %v3790_v28  ;;  %947 = vmatprep.subr.bf16.mxu1 %v3792_v29 }
  0x8e   : > { %895 = vmatpush1.bf16.msra.mxu0 %v3794_v30  ;;  %948 = vmatpush1.bf16.msra.mxu1 %v3795_v31  ;;  %v996_v31 = vld [vmem:[%s5175_s14 + $0x20] sm:$0xff] }
  0x8f   : > { %896 = vmatprep.subr.bf16.mxu0 %v3796_v32  ;;  %949 = vmatprep.subr.bf16.mxu1 %v3798_v33  ;;  %v1012_v32 = vld [vmem:[%s5176_s13 + $0x20] sm:$0xff] }
  0x92   : > { %897 = vmatpush1.bf16.msra.mxu0 %v3800_v34  ;;  %950 = vmatpush1.bf16.msra.mxu1 %v3801_v35 }
  0x93   : > { %898 = vmatprep.subr.bf16.mxu0 %v3802_v36  ;;  %951 = vmatprep.subr.bf16.mxu1 %v3804_v37 }
  0x96   : > { %899 = vmatpush1.bf16.msra.mxu0 %v3806_v38  ;;  %952 = vmatpush1.bf16.msra.mxu1 %v3807_v39 }
  0x97   : > { %900 = vmatprep.subr.bf16.mxu0 %v3808_v41  ;;  %953 = vmatprep.subr.bf16.mxu1 %v3810_v42 }
  0x9a   : > { %901 = vmatpush1.bf16.msra.mxu0 %v3812_v43  ;;  %954 = vmatpush1.bf16.msra.mxu1 %v3813_v44 }
 0x10d   : > { %v657_v45 = vpop.xlane.xlu0 %656 }
 0x10e   : > { %v661_v46 = vpop.xlane.xlu1 %660  ;;  %v665_v47 = vmul.f32 0.0078125, %v657_v45 }
 0x10f   : > { %v667_v48 = vmul.f32 0.0078125, %v661_v46 }
 0x110   : > { %v669_v49 = vadd.f32 1e-05, %v665_v47  ;;  %v998_v47 = vld [vmem:[%s5175_s14 + $0x30] sm:$0xff] }
 0x111   : > { %v659_v50 = vpop.xlane.xlu0 %658  ;;  %v671_v51 = vadd.f32 1e-05, %v667_v48  ;;  %v1014_v48 = vld [vmem:[%s5176_s13 + $0x30] sm:$0xff] }
 0x112   : > { %v663_v52 = vpop.xlane.xlu1 %662  ;;  %3918 = vrsqrt.f32 %v669_v49  ;;  %v666_v53 = vmul.f32 0.0078125, %v659_v50 }
 0x113   : > { %v668_v54 = vmul.f32 0.0078125, %v663_v52  ;;  %3920 = vrsqrt.f32 %v671_v51 }
 0x114   : > { %v670_v55 = vadd.f32 1e-05, %v666_v53 }
 0x115   : > { %v672_v56 = vadd.f32 1e-05, %v668_v54 }
 0x116   : > { %3922 = vrsqrt.f32 %v670_v55 }
 0x117   : > { %3924 = vrsqrt.f32 %v672_v56  ;;  %v997_v56 = vld [vmem:[%s5175_s14 + $0x28] sm:$0xff] }
 0x11f   : > { %v3919_v57 = vpop.eup %3918 }
 0x120   : > { %v3921_v58 = vpop.eup %3920  ;;  %v677_v59 = vmul.f32 %v3919_v57, %v4567_v4 }
 0x121   : > { %v679_v2 = vmul.f32 %v3921_v58, %v4571_v6  ;;  %v1008_v6 = vld [vmem:[%s5176_s13] sm:$0xff]  ;;  %v1013_v58 = vld [vmem:[%s5176_s13 + $0x28] sm:$0xff] }
 0x122   : > { %v688_v0 = vmul.f32 %v3314_v61, %v677_v59 }
 0x123   : > { %v3923_v60 = vpop.eup %3922  ;;  %v690_v8 = vmul.f32 %v3314_v61, %v679_v2 }
 0x124   : > { %v3925_v62 = vpop.eup %3924  ;;  %v678_v63 = vmul.f32 %v3923_v60, %v4569_v5  ;;  %v992_v5 = vld [vmem:[%s5175_s14] sm:$0xff]  ;;  %v999_v60 = vld [vmem:[%s5175_s14 + $0x38] sm:$0xff] }
 0x125   : > { %v680_v3 = vmul.f32 %v3925_v62, %v4577_v9  ;;  %v1015_v62 = vld [vmem:[%s5176_s13 + $0x38] sm:$0xff] }
 0x126   : > { %v689_v1 = vmul.f32 %v3314_v61, %v678_v63 }
 0x127   : > { %v691_v10 = vmul.f32 %v3314_v61, %v680_v3 }
 0x128   : > { %v692_v7 = vpack.c.bf16 %v689_v1, %v688_v0 }
 0x129   : > { %v693_v4 = vpack.c.bf16 %v691_v10, %v690_v8 }
 0x12a   : > { %919 = vmatmul.mubr.bf16.vlgmr.msra.gmra.mxu0 %v692_v7  ;;  %972 = vmatmul.mubr.bf16.vlgmr.msra.gmra.mxu1 %v692_v7 }
 0x12b   : > { %928 = vmatprep.mubr.bf16.mxu0 %v4315_v40  ;;  %981 = vmatprep.mubr.bf16.mxu1 %v4315_v40 }
 0x132   : > { %929 = vmatmul.mubr.bf16.gmra.mxu0 %v693_v4  ;;  %982 = vmatmul.mubr.bf16.gmra.mxu1 %v693_v4 }
 0x1ea   : > { %v920_v9 = vpop.f32.mrf.mxu0  ;;  %v973_v11 = vpop.f32.mrf.mxu1 }
 0x1eb   : > { %v1000_v14 = vmul.f32 %v992_v5, %v920_v9  ;;  %v1016_v15 = vmul.f32 %v1008_v6, %v973_v11 }
 0x1ec   : > { %v922_v16 = vpop.f32.mrf.mxu0  ;;  %v975_v17 = vpop.f32.mrf.mxu1 }
 0x1ed   : > { %v1001_v20 = vmul.f32 %v993_v12, %v922_v16  ;;  %v1017_v21 = vmul.f32 %v1009_v13, %v975_v17  ;;  %v1024_v28 = vadd.f32 %v1016_v15, %v1000_v14 }
 0x1ee   : > { %v924_v22 = vpop.f32.mrf.mxu0  ;;  %v977_v23 = vpop.f32.mrf.mxu1 }
 0x1ef   : > { %v1002_v26 = vmul.f32 %v994_v18, %v924_v22  ;;  %v1018_v27 = vmul.f32 %v1010_v19, %v977_v23  ;;  %v1025_v37 = vadd.f32 %v1017_v21, %v1001_v20  ;;  %v1038_v18 = vlaneseq }
 0x1f0   : > { %v926_v29 = vpop.f32.mrf.mxu0  ;;  %v979_v30 = vpop.f32.mrf.mxu1 }
 0x1f1   : > { %v1026_v33 = vadd.f32 %v1018_v27, %v1002_v26  ;;  %v1003_v34 = vmul.f32 %v995_v24, %v926_v29  ;;  %v4655_v35 = vpack.c.bf16 %v926_v29, %v922_v16  ;;  %v1019_v36 = vmul.f32 %v1011_v25, %v979_v30 }
 0x1f2   : > { %v930_v38 = vpop.f32.mrf.mxu0  ;;  %v983_v39 = vpop.f32.mrf.mxu1  ;;  %v1039_v19 = vshrl.u32 %v1038_v18, 7  ;;  %v1092_v22 = vand.u32 127, %v1038_v18 }
 0x1f3   : > { %v1027_v41 = vadd.f32 %v1019_v36, %v1003_v34  ;;  %v1004_v42 = vmul.f32 %v996_v31, %v930_v38  ;;  %v1020_v43 = vmul.f32 %v1012_v32, %v983_v39  ;;  %v1032_v44 = vpack.c.bf16 %v1026_v33, %v1024_v28 }
 0x1f4   : > { %v4657_v45 = vpop.f32.mrf.mxu0  ;;  %v985_v46 = vpop.f32.mrf.mxu1  ;;  %v1041_v20 = vadd.s32 16, %v1039_v19  ;;  %v1047_v23 = vand.u32 15, %v1039_v19  ;;  %v1040_v24 = vadd.s32 8, %v1039_v19  ;;  %v1042_v25 = vadd.s32 24, %v1039_v19 }
 0x1f5   : > { %v1034_v49 = vpack.c.bf16 %v1027_v41, %v1025_v37  ;;  %1098 = vrot.lane.b32.xlu0 %v1032_v44, %s4316_s24  ;;  %3554 = vmatprep.mubr.msk.bf16.mxu0 %vm1100_vm0, %v1032_v44  ;;  %v1028_v52 = vadd.f32 %v1020_v43, %v1004_v42  ;;  %v1005_v0 = vmul.f32 %v997_v56, %v4657_v45 }
 0x1f6   : > { %v934_v50 = vpop.f32.mrf.mxu0  ;;  %v987_v51 = vpop.f32.mrf.mxu1  ;;  %v1021_v1 = vmul.f32 %v1013_v58, %v985_v46  ;;  %v1061_v21 = vand.u32 15, %v1041_v20  ;;  %vm4709_vm3 = vcmp.le.s32.totalorder %v1092_v22, %v1047_v23  ;;  %v1054_v31 = vand.u32 15, %v1040_v24 }
 0x1f7   : > { %v1006_v53 = vmul.f32 %v998_v47, %v934_v50  ;;  %v1022_v54 = vmul.f32 %v1014_v48, %v987_v51  ;;  %3656 = vmatprep.subr.msk.bf16.mxu0 %vm1100_vm0, %v1034_v49  ;;  %v1108_v55 = vsel %vm1100_vm0, %v1034_v49, 0  ;;  %v1068_v32 = vand.u32 15, %v1042_v25 }
 0x1f8   : > { %3553 = vmatpush3.bf16.xpose.msra.mxu0 %v1108_v55  ;;  %v4675_v59 = vpop.f32.mrf.mxu0  ;;  %v989_v61 = vpop.f32.mrf.mxu1  ;;  %v1029_v7 = vadd.f32 %v1021_v1, %v1005_v0  ;;  %vm4705_vm1 = vcmp.le.s32.totalorder %v1092_v22, %v1061_v21  ;;  %vm4723_vm4 = vcmp.le.s32.totalorder %v1092_v22, %v1054_v31 }
 0x1f9   : > { %v1030_v57 = vadd.f32 %v1022_v54, %v1006_v53  ;;  %v1007_v2 = vmul.f32 %v999_v60, %v4675_v59  ;;  %v1023_v3 = vmul.f32 %v1015_v62, %v989_v61  ;;  %vm4727_vm5 = vcmp.le.s32.totalorder %v1092_v22, %v1068_v32 }
 0x1fa   : > { %v1037_v30 = vpack.c.bf16 %v4675_v59, %v4657_v45 }
 0x1fb   : > { %v1033_v63 = vpack.c.bf16 %v1030_v57, %v1028_v52  ;;  %v1031_v8 = vadd.f32 %v1023_v3, %v1007_v2 }
 0x1fd   : > { %1486 = vrot.lane.b32.xlu1 %v1033_v63, %s4316_s24  ;;  %v1035_v10 = vpack.c.bf16 %v1031_v8, %v1029_v7 }
 0x1ff   : > { %v1495_v13 = vsel %vm1100_vm0, %v1035_v10, 0 }
 0x201   : > { %1291 = vrot.lane.b32.xlu1 %v1034_v49, %s4316_s24 }
 0x205   : > { %1286 = vrot.lane.b32.xlu1 %v1032_v44, %s4317_s11 }
 0x209   : > { %1676 = vrot.lane.b32.xlu1 %v1035_v10, %s4316_s24 }
 0x267   : > { %v1099_v4 = vpop.permute.xlu0 %1098 }
 0x268   : > { %1288 = vrot.lane.b32.xlu0 %v1099_v4, %s4317_s11  ;;  %3555 = vmatmul.mubr.msk.bf16.vlgmr.msra.gmra.mxu0 %vm1100_vm0, %v1099_v4 }
 0x26c   : > { %1671 = vrot.lane.b32.xlu0 %v1033_v63, %s4317_s11 }
 0x26f   : > { %v1487_v5 = vpop.permute.xlu1 %1486 }
 0x270   : > { %1673 = vrot.lane.b32.xlu1 %v1487_v5, %s4317_s11 }
 0x273   : > { %v1292_v6 = vpop.permute.xlu1 %1291 }
 0x274   : > { %v1300_v9 = vsel %vm1100_vm0, %v1292_v6, 0  ;;  %3657 = vmatprep.subr.msk.bf16.mxu0 %vm1100_vm0, %v1292_v6 }
 0x275   : > { %3565 = vmatpush3.bf16.xpose.msra.mxu0 %v1300_v9 }
 0x276   : > { %3658 = vmatprep.subr.msk.bf16.mxu0 %vm1100_vm0, %v1035_v10 }
 0x277   : > { %v1287_v11 = vpop.permute.xlu1 %1286 }
 0x278   : > { %3566 = vmatprep.mubr.msk.bf16.mxu0 %vm1100_vm0, %v1287_v11 }
 0x27b   : > { %v1677_v14 = vpop.permute.xlu1 %1676 }
 0x27c   : > { %v1685_v15 = vsel %vm1100_vm0, %v1677_v14, 0 }
 0x2da   : > { %v1289_v12 = vpop.permute.xlu0 %1288 }
 0x2db   : > { %3567 = vmatmul.mubr.msk.bf16.vlgmr.msra.gmra.mxu0 %vm1100_vm0, %v1289_v12 }
 0x2dc   : > { %3577 = vmatpush3.bf16.xpose.msra.mxu0 %v1495_v13  ;;  %3578 = vmatprep.mubr.msk.bf16.mxu0 %vm1100_vm0, %v1033_v63 }
 0x2dd   : > { %3659 = vmatprep.subr.msk.bf16.mxu0 %vm1100_vm0, %v1677_v14 }
 0x2de   : > { %v1672_v16 = vpop.permute.xlu0 %1671 }
 0x2e2   : > { %v1674_v17 = vpop.permute.xlu1 %1673 }
 0x2e3   : > { %3579 = vmatmul.mubr.msk.bf16.vlgmr.msra.gmra.mxu0 %vm1100_vm0, %v1487_v5 }
 0x2e4   : > { %3589 = vmatpush3.bf16.xpose.msra.mxu0 %v1685_v15  ;;  %3590 = vmatprep.mubr.msk.bf16.mxu0 %vm1100_vm0, %v1672_v16 }
 0x2eb   : > { %3591 = vmatmul.mubr.msk.bf16.vlgmr.msra.gmra.mxu0 %vm1100_vm0, %v1674_v17 }
 0x328   : > { %v3556_v26 = vpop.f32.mrf.mxu0 }
 0x329   : > { %v1161_v28 = vmul.f32 0.17677669, %v3556_v26 }
 0x32a   : > { %v1144_v29 = vpop.f32.mrf.mxu0 }
 0x32b   : > { %v1159_v33 = vmul.f32 0.17677669, %v1144_v29  ;;  %v4715_v34 = vsel %vm4705_vm1, %v1161_v28, -1e+30 }
 0x32c   : > { %v3557_v36 = vpop.f32.mrf.mxu0  ;;  %v1174_v37 = vsel %vm1167_vm2, %v4715_v34, -inf }
 0x32d   : > { %v1162_v38 = vmul.f32 0.17677669, %v3557_v36  ;;  %1175 = vmax.xlane.f32.xlu0 %v1174_v37  ;;  %v4721_v39 = vsel %vm4709_vm3, %v1159_v33, -1e+30 }
 0x32e   : > { %v1147_v41 = vpop.f32.mrf.mxu0  ;;  %v1168_v46 = vsel %vm1167_vm2, %v4721_v39, -inf }
 0x32f   : > { %v1160_v44 = vmul.f32 0.17677669, %v1147_v41  ;;  %v4737_v48 = vsel %vm4727_vm5, %v1162_v38, -1e+30 }
 0x330   : > { %v1177_v50 = vsel %vm1167_vm2, %v4737_v48, -inf }
 0x331   : > { %1169 = vmax.xlane.f32.xlu0 %v1168_v46  ;;  %v1164_v47 = vsel %vm4723_vm4, %v1160_v44, -1e+30 }
 0x332   : > { %v1171_v49 = vsel %vm1167_vm2, %v1164_v47, -inf }
 0x333   : > { %1172 = vmax.xlane.f32.xlu1 %v1171_v49 }
 0x335   : > { %1178 = vmax.xlane.f32.xlu0 %v1177_v50 }
 0x39b   : > { %v3568_v51 = vpop.f32.mrf.mxu0 }
 0x39c   : > { %v1353_v52 = vmul.f32 0.17677669, %v3568_v51 }
 0x39d   : > { %v1336_v53 = vpop.f32.mrf.mxu0 }
 0x39e   : > { %v1351_v54 = vmul.f32 0.17677669, %v1336_v53  ;;  %v4744_v55 = vsel %vm4705_vm1, %v1353_v52, -1e+30 }
 0x39f   : > { %v3569_v56 = vpop.f32.mrf.mxu0  ;;  %v1365_v57 = vsel %vm1167_vm2, %v4744_v55, -inf }
 0x3a0   : > { %v1354_v58 = vmul.f32 0.17677669, %v3569_v56  ;;  %1366 = vmax.xlane.f32.xlu0 %v1365_v57  ;;  %v4750_v60 = vsel %vm4709_vm3, %v1351_v54, -1e+30 }
 0x3a1   : > { %v1339_v61 = vpop.f32.mrf.mxu0  ;;  %v1359_v1 = vsel %vm1167_vm2, %v4750_v60, -inf }
 0x3a2   : > { %v1352_v62 = vmul.f32 0.17677669, %v1339_v61  ;;  %v4754_v63 = vsel %vm4727_vm5, %v1354_v58, -1e+30 }
 0x3a3   : > { %v3580_v0 = vpop.f32.mrf.mxu0  ;;  %v1368_v2 = vsel %vm1167_vm2, %v4754_v63, -inf }
 0x3a4   : > { %v1548_v3 = vmul.f32 0.17677669, %v3580_v0  ;;  %1360 = vmax.xlane.f32.xlu0 %v1359_v1  ;;  %1369 = vmax.xlane.f32.xlu1 %v1368_v2  ;;  %v4762_v7 = vsel %vm4723_vm4, %v1352_v62, -1e+30 }
 0x3a5   : > { %v1531_v8 = vpop.f32.mrf.mxu0  ;;  %v1362_v6 = vsel %vm1167_vm2, %v4762_v7, -inf }
 0x3a6   : > { %v1546_v10 = vmul.f32 0.17677669, %v1531_v8  ;;  %v4766_v4 = vsel %vm4705_vm1, %v1548_v3, -1e+30 }
 0x3a7   : > { %v3581_v5 = vpop.f32.mrf.mxu0  ;;  %v1560_v9 = vsel %vm1167_vm2, %v4766_v4, -inf }
 0x3a8   : > { %v1549_v11 = vmul.f32 0.17677669, %v3581_v5  ;;  %1363 = vmax.xlane.f32.xlu1 %v1362_v6  ;;  %1561 = vmax.xlane.f32.xlu0 %v1560_v9  ;;  %v4774_v12 = vsel %vm4709_vm3, %v1546_v10, -1e+30 }
 0x3a9   : > { %v1534_v13 = vpop.f32.mrf.mxu0  ;;  %v1554_v17 = vsel %vm1167_vm2, %v4774_v12, -inf }
 0x3aa   : > { %v1547_v14 = vmul.f32 0.17677669, %v1534_v13  ;;  %v4778_v15 = vsel %vm4727_vm5, %v1549_v11, -1e+30 }
 0x3ab   : > { %v3592_v16 = vpop.f32.mrf.mxu0  ;;  %v1563_v18 = vsel %vm1167_vm2, %v4778_v15, -inf }
 0x3ac   : > { %v1738_v19 = vmul.f32 0.17677669, %v3592_v16  ;;  %1555 = vmax.xlane.f32.xlu0 %v1554_v17  ;;  %1564 = vmax.xlane.f32.xlu1 %v1563_v18  ;;  %v4786_v20 = vsel %vm4723_vm4, %v1547_v14, -1e+30 }
 0x3ad   : > { %v1721_v21 = vpop.f32.mrf.mxu0  ;;  %v1557_v25 = vsel %vm1167_vm2, %v4786_v20, -inf }
 0x3ae   : > { %v1736_v22 = vmul.f32 0.17677669, %v1721_v21  ;;  %v4790_v23 = vsel %vm4705_vm1, %v1738_v19, -1e+30 }
 0x3af   : > { %v1750_v24 = vsel %vm1167_vm2, %v4790_v23, -inf }
 0x3b0   : > { %1751 = vmax.xlane.f32.xlu0 %v1750_v24  ;;  %1558 = vmax.xlane.f32.xlu1 %v1557_v25  ;;  %v4798_v26 = vsel %vm4709_vm3, %v1736_v22, -1e+30 }
 0x3b1   : > { %v1744_v28 = vsel %vm1167_vm2, %v4798_v26, -inf }
 0x3b4   : > { %1745 = vmax.xlane.f32.xlu0 %v1744_v28 }
 0x3b6   : > { %v1176_v29 = vpop.xlane.xlu0 %1175 }
 0x3b7   : > { %v1182_v44 = vsub.f32 %v4715_v34, %v1176_v29 }
 0x3b9   : > { %v1188_v46 = vmul.f32 1.442695, %v1182_v44 }
 0x3ba   : > { %v1170_v27 = vpop.xlane.xlu0 %1169 }
 0x3bb   : > { %v1180_v31 = vsub.f32 %v4721_v39, %v1170_v27 }
 0x3bc   : > { %v1173_v32 = vpop.xlane.xlu1 %1172 }
 0x3bd   : > { %v1184_v33 = vmul.f32 1.442695, %v1180_v31  ;;  %v1181_v36 = vsub.f32 %v1164_v47, %v1173_v32  ;;  %v3593_v47 = vpop.f32.mrf.mxu0 }
 0x3be   : > { %v1739_v45 = vmul.f32 0.17677669, %v3593_v47  ;;  %v1179_v43 = vpop.xlane.xlu0 %1178 }
 0x3bf   : > { %v1186_v37 = vmul.f32 1.442695, %v1181_v36  ;;  %3926 = vpow2.f32 %v1184_v33  ;;  %v1724_v59 = vpop.f32.mrf.mxu0  ;;  %v1183_v54 = vsub.f32 %v4737_v48, %v1179_v43 }
 0x3c0   : > { %v1737_v50 = vmul.f32 0.17677669, %v1724_v59 }
 0x3c1   : > { %3928 = vpow2.f32 %v1186_v37  ;;  %1397 = vrot.lane.b32.xlu1 %v4655_v35, %s4318_s15  ;;  %v1190_v56 = vmul.f32 1.442695, %v1183_v54 }
 0x3c2   : > { %3930 = vpow2.f32 %v1188_v46  ;;  %v4830_v52 = vsel %vm4723_vm4, %v1737_v50, -1e+30 }
 0x3c3   : > { %v1747_v53 = vsel %vm1167_vm2, %v4830_v52, -inf  ;;  %3932 = vpow2.f32 %v1190_v56 }
 0x3c5   : > { %1593 = vrot.lane.b32.xlu1 %v1037_v30, %s4317_s11 }
 0x3ca   : > { %1207 = vrot.lane.b32.xlu0 %v4655_v35, %s4317_s11  ;;  %v4822_v35 = vsel %vm4727_vm5, %v1739_v45, -1e+30 }
 0x3cb   : > { %v1753_v34 = vsel %vm1167_vm2, %v4822_v35, -inf }
 0x3cc   : > { %v4810_v38 = vpop.eup %3926 }
 0x3cd   : > { %v1192_v56 = vsel %vm1167_vm2, %v4810_v38, 0.0 }
 0x3ce   : > { %v4812_v39 = vpop.eup %3928 }
 0x3cf   : > { %v1204_v41 = vpack.c.bf16 %v4812_v39, %v4810_v38  ;;  %v4818_v49 = vpop.eup %3930 }
 0x3d0   : > { %v1198_v51 = vsel %vm1167_vm2, %v4818_v49, 0.0  ;;  %v4836_v57 = vpop.eup %3932 }
 0x3d1   : > { %3560 = vmatprep.mubr.msk.bf16.mxu1 %vm1167_vm2, %v1204_v41  ;;  %v1201_v58 = vsel %vm1167_vm2, %v4836_v57, 0.0 }
 0x3e9   : > { %1199 = vadd.xlane.f32.xlu0 %v1198_v51  ;;  %1754 = vmax.xlane.f32.xlu1 %v1753_v34 }
 0x3ed   : > { %1748 = vmax.xlane.f32.xlu1 %v1747_v53 }
 0x3fe   : > { %1782 = vrot.lane.b32.xlu1 %v1037_v30, %s4318_s15 }
 0x422   : > { %1202 = vadd.xlane.f32.xlu1 %v1201_v58 }
 0x429   : > { %v1367_v42 = vpop.xlane.xlu0 %1366 }
 0x42a   : > { %v1373_v61 = vsub.f32 %v4744_v55, %v1367_v42 }
 0x42c   : > { %v1379_v62 = vmul.f32 1.442695, %v1373_v61 }
 0x42d   : > { %v1361_v0 = vpop.xlane.xlu0 %1360  ;;  %v1370_v1 = vpop.xlane.xlu1 %1369 }
 0x42e   : > { %3934 = vpow2.f32 %v1379_v62  ;;  %v1371_v2 = vsub.f32 %v4750_v60, %v1361_v0  ;;  %v1374_v3 = vsub.f32 %v4754_v63, %v1370_v1 }
 0x430   : > { %v1375_v48 = vmul.f32 1.442695, %v1371_v2  ;;  %v1381_v8 = vmul.f32 1.442695, %v1374_v3 }
 0x431   : > { %v1364_v10 = vpop.xlane.xlu1 %1363  ;;  %v1562_v5 = vpop.xlane.xlu0 %1561 }
 0x432   : > { %3936 = vpow2.f32 %v1375_v48  ;;  %v1372_v6 = vsub.f32 %v4762_v7, %v1364_v10  ;;  %v1568_v9 = vsub.f32 %v4766_v4, %v1562_v5 }
 0x433   : > { %3938 = vpow2.f32 %v1381_v8 }
 0x434   : > { %v1377_v11 = vmul.f32 1.442695, %v1372_v6  ;;  %v1574_v55 = vmul.f32 1.442695, %v1568_v9 }
 0x435   : > { %v1556_v13 = vpop.xlane.xlu0 %1555  ;;  %v1565_v14 = vpop.xlane.xlu1 %1564 }
 0x436   : > { %3940 = vpow2.f32 %v1377_v11  ;;  %v1566_v16 = vsub.f32 %v4774_v12, %v1556_v13  ;;  %v1569_v60 = vsub.f32 %v4778_v15, %v1565_v14 }
 0x437   : > { %3942 = vpow2.f32 %v1574_v55 }
 0x438   : > { %v1576_v63 = vmul.f32 1.442695, %v1569_v60  ;;  %v1570_v19 = vmul.f32 1.442695, %v1566_v16 }
 0x439   : > { %v1752_v17 = vpop.xlane.xlu0 %1751  ;;  %v1559_v18 = vpop.xlane.xlu1 %1558 }
 0x43a   : > { %v1567_v21 = vsub.f32 %v4786_v20, %v1559_v18  ;;  %3944 = vpow2.f32 %v1576_v63  ;;  %v1758_v4 = vsub.f32 %v4790_v23, %v1752_v17 }
 0x43b   : > { %v3935_v7 = vpop.eup %3934  ;;  %3946 = vpow2.f32 %v1570_v19 }
 0x43c   : > { %v1572_v22 = vmul.f32 1.442695, %v1567_v21  ;;  %v1389_v24 = vsel %vm1167_vm2, %v3935_v7, 0.0  ;;  %v1764_v29 = vmul.f32 1.442695, %v1758_v4 }
 0x43d   : > { %1390 = vadd.xlane.f32.xlu0 %v1389_v24  ;;  %v1746_v25 = vpop.xlane.xlu0 %1745  ;;  %v1398_v20 = vpop.permute.xlu1 %1397 }
 0x43e   : > { %v1756_v12 = vsub.f32 %v4798_v26, %v1746_v25  ;;  %3948 = vpow2.f32 %v1572_v22  ;;  %v1205_v26 = vpack.c.bf16 %v4836_v57, %v4818_v49 }
 0x43f   : > { %v3937_v15 = vpop.eup %3936 }
 0x440   : > { %v3939_v28 = vpop.eup %3938  ;;  %v1760_v27 = vmul.f32 1.442695, %v1756_v12  ;;  %v1383_v31 = vsel %vm1167_vm2, %v3937_v15, 0.0 }
 0x441   : > { %1384 = vadd.xlane.f32.xlu0 %v1383_v31  ;;  %v1208_v32 = vpop.permute.xlu0 %1207  ;;  %v1392_v23 = vsel %vm1167_vm2, %v3939_v28, 0.0  ;;  %v1594_v41 = vpop.permute.xlu1 %1593  ;;  %v1396_v49 = vpack.c.bf16 %v3939_v28, %v3935_v7 }
 0x442   : > { %3950 = vpow2.f32 %v1760_v27  ;;  %1393 = vadd.xlane.f32.xlu1 %v1392_v23  ;;  %3558 = vmatprep.subr.bf16.mxu1 %v1208_v32 }
 0x443   : > { %v3941_v33 = vpop.eup %3940  ;;  %3559 = vmatpush3.bf16.msra.mxu1 %v1208_v32  ;;  %3952 = vpow2.f32 %v1764_v29 }
 0x444   : > { %3570 = vmatprep.subr.bf16.mxu1 %v1398_v20  ;;  %v1386_v36 = vsel %vm1167_vm2, %v3941_v33, 0.0  ;;  %v1395_v37 = vpack.c.bf16 %v3941_v33, %v3937_v15  ;;  %v3943_v30 = vpop.eup %3942 }
 0x445   : > { %1387 = vadd.xlane.f32.xlu0 %v1386_v36  ;;  %v1584_v46 = vsel %vm1167_vm2, %v3943_v30, 0.0 }
 0x446   : > { %3561 = vmatmul.mubr.msk.bf16.vlgmr.msra.gmra.mxu1 %vm1167_vm2, %v1205_v26 }
 0x447   : > { %3571 = vmatpush3.bf16.msra.mxu1 %v1398_v20  ;;  %3572 = vmatprep.mubr.msk.bf16.mxu1 %vm1167_vm2, %v1395_v37  ;;  %v3945_v44 = vpop.eup %3944 }
 0x448   : > { %3582 = vmatprep.subr.bf16.mxu1 %v1594_v41  ;;  %v1587_v47 = vsel %vm1167_vm2, %v3945_v44, 0.0  ;;  %v3947_v45 = vpop.eup %3946  ;;  %v1591_v54 = vpack.c.bf16 %v3945_v44, %v3943_v30 }
 0x449   : > { %1585 = vadd.xlane.f32.xlu0 %v1584_v46  ;;  %1588 = vadd.xlane.f32.xlu1 %v1587_v47  ;;  %v1578_v57 = vsel %vm1167_vm2, %v3947_v45, 0.0 }
 0x44b   : > { %v3949_v59 = vpop.eup %3948 }
 0x44c   : > { %v1590_v50 = vpack.c.bf16 %v3949_v59, %v3947_v45  ;;  %v1581_v5 = vsel %vm1167_vm2, %v3949_v59, 0.0 }
 0x44e   : > { %3573 = vmatmul.mubr.msk.bf16.vlgmr.msra.gmra.mxu1 %vm1167_vm2, %v1396_v49 }
 0x44f   : > { %v3951_v51 = vpop.eup %3950  ;;  %3583 = vmatpush3.bf16.msra.mxu1 %v1594_v41  ;;  %3584 = vmatprep.mubr.msk.bf16.mxu1 %vm1167_vm2, %v1590_v50 }
 0x450   : > { %v1768_v34 = vsel %vm1167_vm2, %v3951_v51, 0.0  ;;  %v3953_v53 = vpop.eup %3952 }
 0x451   : > { %1769 = vadd.xlane.f32.xlu0 %v1768_v34  ;;  %v1774_v43 = vsel %vm1167_vm2, %v3953_v53, 0.0  ;;  %v3814_v34 = vld [vmem:[%s4526_s1 + $0x38] sm:$0xff]  }
 0x452   : > { %3600 = vmatprep.subr.bf16.mxu0 %v3814_v34 }
 0x453   : > { %3601 = vmatpush3.bf16.msra.mxu0 %v3814_v34  ;;  %v4048_v34 = vld [vmem:[#allocation2] sm:$0xff] }
 0x455   : > { %1775 = vadd.xlane.f32.xlu0 %v1774_v43 }
 0x456   : > { %3585 = vmatmul.mubr.msk.bf16.vlgmr.msra.gmra.mxu1 %vm1167_vm2, %v1591_v54 }
 0x459   : > { %1193 = vadd.xlane.f32.xlu0 %v1192_v56 }
 0x45d   : > { %1579 = vadd.xlane.f32.xlu0 %v1578_v57 }
 0x472   : > { %v1755_v58 = vpop.xlane.xlu1 %1754  ;;  %v1200_v6 = vpop.xlane.xlu0 %1199 }
 0x473   : > { %v1759_v42 = vsub.f32 %v4822_v35, %v1755_v58  ;;  %v3816_v58 = vld [vmem:[%s4526_s1 + $0x28] sm:$0xff]  }
 0x475   : > { %v1766_v61 = vmul.f32 1.442695, %v1759_v42 }
 0x476   : > { %v1749_v62 = vpop.xlane.xlu1 %1748 }
 0x477   : > { %v1757_v0 = vsub.f32 %v4830_v52, %v1749_v62  ;;  %3954 = vpow2.f32 %v1766_v61  ;;  %v1195_v52 = vsel %vm1167_vm2, %v4812_v39, 0.0  ;;  %v3817_v61 = vld [vmem:[%s4526_s1 + $0x20] sm:$0xff]  }
 0x479   : > { %v1762_v1 = vmul.f32 1.442695, %v1757_v0 }
 0x47a   : > { %v1783_v2 = vpop.permute.xlu1 %1782 }
 0x47b   : > { %3956 = vpow2.f32 %v1762_v1  ;;  %3594 = vmatprep.subr.bf16.mxu1 %v1783_v2 }
 0x47c   : > { %3595 = vmatpush3.bf16.msra.mxu1 %v1783_v2  ;;  %3958 = vrcp.f32 %v1200_v6 }
 0x484   : > { %v3955_v3 = vpop.eup %3954 }
 0x485   : > { %v1781_v10 = vpack.c.bf16 %v3955_v3, %v3953_v53  ;;  %v1777_v35 = vsel %vm1167_vm2, %v3955_v3, 0.0  ;;  %v3815_v53 = vld [vmem:[%s4526_s1 + $0x30] sm:$0xff]  }
 0x486   : > { %3602 = vmatprep.subr.bf16.mxu0 %v3815_v53 }
 0x487   : > { %3603 = vmatpush3.bf16.msra.mxu0 %v3815_v53 }
 0x488   : > { %v3957_v48 = vpop.eup %3956  ;;  %3604 = vmatprep.subr.bf16.mxu0 %v3816_v58 }
 0x489   : > { %v1771_v38 = vsel %vm1167_vm2, %v3957_v48, 0.0  ;;  %v1780_v8 = vpack.c.bf16 %v3957_v48, %v3951_v51  ;;  %v3959_v17 = vpop.eup %3958  ;;  %v3818_v48 = vld [vmem:[%s4526_s1 + $0x18] sm:$0xff]  }
 0x48a   : > { %1772 = vadd.xlane.f32.xlu1 %v1771_v38  ;;  %v3819_v38 = vld [vmem:[%s4526_s1 + $0x10] sm:$0xff]  }
 0x48b   : > { %3596 = vmatprep.mubr.msk.bf16.mxu1 %vm1167_vm2, %v1780_v8  ;;  %3605 = vmatpush3.bf16.msra.mxu0 %v3816_v58 }
 0x48c   : > { %3597 = vmatmul.mubr.msk.bf16.vlgmr.msra.gmra.mxu1 %vm1167_vm2, %v1781_v10  ;;  %3606 = vmatprep.subr.bf16.mxu0 %v3817_v61  ;;  %v3820_v10 = vld [vmem:[%s4526_s1 + $0x8] sm:$0xff]  }
 0x48d   : > { %2352 = vmatprep.mubr.bf16.mxu1 %v4315_v40 }
 0x48e   : > { %1778 = vadd.xlane.f32.xlu1 %v1777_v35  ;;  %v3821_v35 = vld [vmem:[%s4526_s1] sm:$0xff]  }
 0x48f   : > { %3607 = vmatpush3.bf16.msra.mxu0 %v3817_v61  ;;  %v3831_v61 = vld [vmem:[%s4547_s0 + $0x128] ss:$24 sps:$4 sm:$0xff]  }
 0x490   : > { %3608 = vmatprep.subr.bf16.mxu0 %v3818_v48 }
 0x492   : > { %1196 = vadd.xlane.f32.xlu1 %v1195_v52 }
 0x493   : > { %3609 = vmatpush3.bf16.msra.mxu0 %v3818_v48  ;;  %v3840_v48 = vld [vmem:[%s4547_s0 + $0xc0] ss:$24 sps:$4 sm:$0xff]  }
 0x494   : > { %3610 = vmatprep.subr.bf16.mxu0 %v3819_v38 }
 0x496   : > { %1582 = vadd.xlane.f32.xlu1 %v1581_v5 }
 0x497   : > { %3611 = vmatpush3.bf16.msra.mxu0 %v3819_v38  ;;  %v3845_v38 = vld [vmem:[%s4547_s0 + $0xcc] ss:$24 sps:$4 sm:$0xff]  }
 0x498   : > { %3612 = vmatprep.subr.bf16.mxu0 %v3820_v10 }
 0x49b   : > { %3613 = vmatpush3.bf16.msra.mxu0 %v3820_v10  ;;  %v3848_v10 = vld [vmem:[%s4547_s0 + $0x94] ss:$24 sps:$4 sm:$0xff]  }
 0x49c   : > { %3614 = vmatprep.subr.bf16.mxu0 %v3821_v35 }
 0x49f   : > { %3615 = vmatpush3.bf16.msra.mxu0 %v3821_v35  ;;  %v3846_v35 = vld [vmem:[%s4547_s0 + $0x90] ss:$24 sps:$4 sm:$0xff]  }
 0x4ab   : > { %v1203_v63 = vpop.xlane.xlu1 %1202 }
 0x4c6   : > { %v1391_v9 = vpop.xlane.xlu0 %1390 }
 0x4ca   : > { %v1385_v11 = vpop.xlane.xlu0 %1384 }
 0x4cb   : > { %v1394_v39 = vpop.xlane.xlu1 %1393 }
 0x4ce   : > { %v1388_v55 = vpop.xlane.xlu0 %1387 }
 0x4d2   : > { %v1586_v13 = vpop.xlane.xlu0 %1585  ;;  %v1589_v15 = vpop.xlane.xlu1 %1588 }
 0x4da   : > { %v4878_v14 = vpop.xlane.xlu0 %1769 }
 0x4de   : > { %v4880_v16 = vpop.xlane.xlu0 %1775 }
 0x4e2   : > { %v1194_v60 = vpop.xlane.xlu0 %1193 }
 0x4e3   : > { %3960 = vrcp.f32 %v1194_v60 }
 0x4e4   : > { %3962 = vrcp.f32 %v1203_v63 }
 0x4e5   : > { %3964 = vrcp.f32 %v1391_v9 }
 0x4e6   : > { %3966 = vrcp.f32 %v1385_v11  ;;  %v1580_v7 = vpop.xlane.xlu0 %1579 }
 0x4e7   : > { %3968 = vrcp.f32 %v1394_v39 }
 0x4e8   : > { %3970 = vrcp.f32 %v1586_v13 }
 0x4e9   : > { %3972 = vrcp.f32 %v1388_v55 }
 0x4ea   : > { %3974 = vrcp.f32 %v1580_v7 }
 0x4eb   : > { %3976 = vrcp.f32 %v1589_v15 }
 0x4f0   : > { %v3961_v21 = vpop.eup %3960 }
 0x4f1   : > { %v3963_v24 = vpop.eup %3962 }
 0x4f2   : > { %v3965_v29 = vpop.eup %3964 }
 0x4f3   : > { %v3967_v20 = vpop.eup %3966 }
 0x4f4   : > { %v3969_v36 = vpop.eup %3968 }
 0x4f5   : > { %v3971_v41 = vpop.eup %3970 }
 0x4f6   : > { %v3973_v46 = vpop.eup %3972 }
 0x4f7   : > { %v3975_v59 = vpop.eup %3974 }
 0x4f8   : > { %v3977_v56 = vpop.eup %3976 }
 0x506   : > { %v3562_v18 = vpop.f32.mrf.mxu1 }
 0x507   : > { %v1271_v19 = vmul.f32 %v3959_v17, %v3562_v18 }
 0x508   : > { %v1250_v4 = vpop.f32.mrf.mxu1 }
 0x509   : > { %v1269_v22 = vmul.f32 %v3961_v21, %v1250_v4  ;;  %1277 = vrot.lane.b32.xlu0 %v1271_v19, %s4318_s15 }
 0x50a   : > { %v3563_v25 = vpop.f32.mrf.mxu1 }
 0x50b   : > { %1273 = vst.msk [vmem:[#allocation3] sm:$0xff] %vm1100_vm0, %v1269_v22  ;;  %v1272_v12 = vmul.f32 %v3963_v24, %v3563_v25 }
 0x50c   : > { %v1253_v28 = vpop.f32.mrf.mxu1 }
 0x50d   : > { %1279 = vrot.lane.b32.xlu1 %v1272_v12, %s4318_s15 }
 0x50e   : > { %v3574_v27 = vpop.f32.mrf.mxu1 }
 0x50f   : > { %v1461_v31 = vmul.f32 %v3965_v29, %v3574_v27 }
 0x510   : > { %v1440_v32 = vpop.f32.mrf.mxu1 }
 0x511   : > { %v1459_v23 = vmul.f32 %v3967_v20, %v1440_v32  ;;  %1476 = vrot.lane.b32.xlu0 %v1461_v31, %s4316_s24 }
 0x512   : > { %v3575_v33 = vpop.f32.mrf.mxu1 }
 0x513   : > { %1465 = vrot.lane.b32.xlu1 %v1459_v23, %s4317_s11  ;;  %v1773_v26 = vpop.xlane.xlu1 %1772  ;;  %v1462_v30 = vmul.f32 %v3969_v36, %v3575_v33  ;;  %v3822_v23 = vld [vmem:[%s4547_s0 + $0x150] ss:$24 sps:$4 sm:$0xff]   ;;  %v3824_v33 = vld [vmem:[%s4547_s0 + $0x154] ss:$24 sps:$4 sm:$0xff]  }
 0x514   : > { %v1443_v37 = vpop.f32.mrf.mxu1  ;;  %v3827_v36 = vld [vmem:[%s4547_s0 + $0x15c] ss:$24 sps:$4 sm:$0xff]   ;;  %2320 = vmatprep.subr.bf16.mxu1 %v3824_v33  ;;  %v3371_v33 = vld [vmem:[%s517_s17] ss:$0 sm:$0xff] }
 0x515   : > { %v1460_v50 = vmul.f32 %v3973_v46, %v1443_v37  ;;  %v3830_v37 = vld [vmem:[%s4547_s0 + $0x124] ss:$24 sps:$4 sm:$0xff]   ;;  %2321 = vmatpush1.bf16.msra.mxu1 %v3822_v23  ;;  %2373 = vmatprep.subr.bf16.mxu0 %v3827_v36  ;;  %v4046_v46 = vld [vmem:[#allocation2 + $0x10] sm:$0xff] }
 0x516   : > { %v3586_v44 = vpop.f32.mrf.mxu1  ;;  %2322 = vmatprep.subr.bf16.mxu1 %v3830_v37 }
 0x517   : > { %v1657_v47 = vmul.f32 %v3971_v41, %v3586_v44  ;;  %1478 = vrot.lane.b32.xlu1 %v1462_v30, %s4316_s24  ;;  %v1779_v45 = vpop.xlane.xlu1 %1778  ;;  %v3828_v30 = vld [vmem:[%s4547_s0 + $0x120] ss:$24 sps:$4 sm:$0xff]  }
 0x518   : > { %v1636_v49 = vpop.f32.mrf.mxu1 }
 0x519   : > { %v1655_v51 = vmul.f32 %v3975_v59, %v1636_v49  ;;  %1663 = vrot.lane.b32.xlu0 %v1657_v47, %s4318_s15  ;;  %2323 = vmatpush1.bf16.msra.mxu1 %v3828_v30  ;;  %v4047_v59 = vld [vmem:[#allocation2 + $0x18] sm:$0xff] }
 0x51a   : > { %v3587_v43 = vpop.f32.mrf.mxu1 }
 0x51b   : > { %1659 = vst.msk [vmem:[#allocation3 + $0x10] sm:$0xff] %vm1100_vm0, %v1655_v51  ;;  %1467 = vrot.lane.b32.xlu1 %v1460_v50, %s4317_s11  ;;  %v1197_v54 = vpop.xlane.xlu1 %1196  ;;  %v1658_v57 = vmul.f32 %v3977_v56, %v3587_v43  ;;  %v4049_v43 = vld [vmem:[#allocation2 + $0x8] sm:$0xff] }
 0x51c   : > { %3978 = vrcp.f32 %v1197_v54  ;;  %v1639_v2 = vpop.f32.mrf.mxu1 }
 0x51f   : > { %1665 = vrot.lane.b32.xlu1 %v1658_v57, %s4318_s15  ;;  %v1583_v42 = vpop.xlane.xlu1 %1582 }
 0x520   : > { %3980 = vrcp.f32 %v1583_v42  ;;  %v3833_v42 = vld [vmem:[%s4547_s0 + $0x12c] ss:$24 sps:$4 sm:$0xff]  }
 0x521   : > { %3982 = vrcp.f32 %v4878_v14 }
 0x522   : > { %3984 = vrcp.f32 %v4880_v16 }
 0x523   : > { %3986 = vrcp.f32 %v1773_v26  ;;  %v3825_v26 = vld [vmem:[%s4547_s0 + $0x158] ss:$24 sps:$4 sm:$0xff]  }
 0x524   : > { %3988 = vrcp.f32 %v1779_v45 }
 0x529   : > { %v3979_v62 = vpop.eup %3978 }
 0x52a   : > { %v1270_v0 = vmul.f32 %v3979_v62, %v1253_v28  ;;  %v3836_v62 = vld [vmem:[%s4547_s0 + $0xf4] ss:$24 sps:$4 sm:$0xff]  }
 0x52b   : > { %2324 = vmatprep.subr.bf16.mxu1 %v3836_v62  ;;  %v3884_v62 = vld [vmem:[%s4547_s0 + $0xa4] ss:$24 sps:$4 sm:$0xff]  }
 0x52c   : > { %1274 = vst.msk [vmem:[#allocation3 + $0x8] sm:$0xff] %vm1100_vm0, %v1270_v0  ;;  %v3834_v0 = vld [vmem:[%s4547_s0 + $0xf0] ss:$24 sps:$4 sm:$0xff]  }
 0x52d   : > { %v3981_v1 = vpop.eup %3980  ;;  %2325 = vmatpush1.bf16.msra.mxu1 %v3834_v0  ;;  %v3882_v0 = vld [vmem:[%s4547_s0 + $0xa0] ss:$24 sps:$4 sm:$0xff]  }
 0x52e   : > { %v1656_v3 = vmul.f32 %v3981_v1, %v1639_v2  ;;  %v3983_v52 = vpop.eup %3982  ;;  %v3839_v1 = vld [vmem:[%s4547_s0 + $0xfc] ss:$24 sps:$4 sm:$0xff]   ;;  %v3837_v2 = vld [vmem:[%s4547_s0 + $0xf8] ss:$24 sps:$4 sm:$0xff]  }
 0x52f   : > { %v3985_v11 = vpop.eup %3984 }
 0x530   : > { %1660 = vst.msk [vmem:[#allocation3 + $0x18] sm:$0xff] %vm1100_vm0, %v1656_v3  ;;  %v3987_v55 = vpop.eup %3986  ;;  %v3842_v3 = vld [vmem:[%s4547_s0 + $0xc4] ss:$24 sps:$4 sm:$0xff]  }
 0x531   : > { %v3989_v60 = vpop.eup %3988  ;;  %2326 = vmatprep.subr.bf16.mxu1 %v3842_v3  ;;  %v3890_v3 = vld [vmem:[%s4547_s0 + $0x44] ss:$24 sps:$4 sm:$0xff]  }
 0x532   : > { %2327 = vmatpush1.bf16.msra.mxu1 %v3840_v48  ;;  %v3888_v48 = vld [vmem:[%s4547_s0 + $0x40] ss:$24 sps:$4 sm:$0xff]  }
 0x533   : > { %2328 = vmatprep.subr.bf16.mxu1 %v3848_v10  ;;  %v3894_v10 = vld [vmem:[%s4552_s29 + $0x78] sm:$0xff]  }
 0x536   : > { %2329 = vmatpush1.bf16.msra.mxu1 %v3846_v35  ;;  %v3895_v35 = vld [vmem:[%s4552_s29 + $0x38] sm:$0xff]  }
 0x54c   : > { %v3598_v8 = vpop.f32.mrf.mxu1 }
 0x54d   : > { %v1846_v14 = vmul.f32 %v3985_v11, %v3598_v8  ;;  %v3843_v8 = vld [vmem:[%s4547_s0 + $0xc8] ss:$24 sps:$4 sm:$0xff]   ;;  %v3857_v11 = vld [vmem:[%s4547_s0 + $0x6c] ss:$24 sps:$4 sm:$0xff]  }
 0x54e   : > { %v1825_v5 = vpop.f32.mrf.mxu1 }
 0x54f   : > { %v1844_v6 = vmul.f32 %v3983_v52, %v1825_v5  ;;  %v3851_v52 = vld [vmem:[%s4547_s0 + $0x9c] ss:$24 sps:$4 sm:$0xff]   ;;  %v3849_v5 = vld [vmem:[%s4547_s0 + $0x98] ss:$24 sps:$4 sm:$0xff]  }
 0x550   : > { %v3599_v9 = vpop.f32.mrf.mxu1 }
 0x551   : > { %1850 = vrot.lane.b32.xlu0 %v1844_v6, %s4317_s11  ;;  %v1847_v63 = vmul.f32 %v3989_v60, %v3599_v9  ;;  %v3854_v6 = vld [vmem:[%s4547_s0 + $0x64] ss:$24 sps:$4 sm:$0xff]   ;;  %v3852_v9 = vld [vmem:[%s4547_s0 + $0x60] ss:$24 sps:$4 sm:$0xff]  }
 0x552   : > { %v1828_v13 = vpop.f32.mrf.mxu1  ;;  %2330 = vmatprep.subr.bf16.mxu1 %v3854_v6  ;;  %v3861_v60 = vld [vmem:[%s4547_s0 + $0x38] ss:$24 sps:$4 sm:$0xff]  }
 0x553   : > { %v1845_v16 = vmul.f32 %v3987_v55, %v1828_v13  ;;  %v3855_v55 = vld [vmem:[%s4547_s0 + $0x68] ss:$24 sps:$4 sm:$0xff]   ;;  %v3860_v13 = vld [vmem:[%s4547_s0 + $0x34] ss:$24 sps:$4 sm:$0xff]   ;;  %2331 = vmatpush1.bf16.msra.mxu1 %v3852_v9  ;;  %v3898_v6 = vld [vmem:[%s4552_s29 + $0xb8] sm:$0xff]  }
 0x554   : > { %2332 = vmatprep.subr.bf16.mxu1 %v3860_v13  ;;  %v3899_v9 = vld [vmem:[%s4552_s29 + $0x68] sm:$0xff]   ;;  %v3903_v13 = vld [vmem:[%s4552_s29 + $0x20] sm:$0xff]  }
 0x555   : > { %1860 = vrot.lane.b32.xlu0 %v1846_v14, %s4316_s24  ;;  %1852 = vrot.lane.b32.xlu1 %v1845_v16, %s4317_s11  ;;  %v3863_v14 = vld [vmem:[%s4547_s0 + $0x3c] ss:$24 sps:$4 sm:$0xff]   ;;  %v3858_v16 = vld [vmem:[%s4547_s0 + $0x30] ss:$24 sps:$4 sm:$0xff]  }
 0x557   : > { %2333 = vmatpush1.bf16.msra.mxu1 %v3858_v16  ;;  %v3905_v16 = vld [vmem:[%s4552_s29 + $0x58] sm:$0xff]  }
 0x559   : > { %1862 = vrot.lane.b32.xlu1 %v1847_v63, %s4316_s24  ;;  %v3866_v63 = vld [vmem:[%s4547_s0 + $0x4] ss:$24 sps:$4 sm:$0xff]  }
 0x55a   : > { %2334 = vmatprep.subr.bf16.mxu1 %v3866_v63  ;;  %v3907_v63 = vld [vmem:[%s4552_s29 + $0xa0] sm:$0xff]  }
 0x57b   : > { %v1278_v39 = vpop.permute.xlu0 %1277 }
 0x57c   : > { %1284 = vst.msk [vmem:[#allocation3] sm:$0xff] %vm1283_vm6, %v1278_v39  ;;  %v3869_v39 = vld [vmem:[%s4547_s0 + $0xc] ss:$24 sps:$4 sm:$0xff]  }
 0x57f   : > { %v1280_v17 = vpop.permute.xlu1 %1279 }
 0x580   : > { %1285 = vst.msk [vmem:[#allocation3 + $0x8] sm:$0xff] %vm1283_vm6, %v1280_v17  ;;  %v3864_v17 = vld [vmem:[%s4547_s0] ss:$24 sps:$4 sm:$0xff]  }
 0x581   : > { %2335 = vmatpush1.bf16.msra.mxu1 %v3864_v17  ;;  %v3909_v17 = vld [vmem:[%s4552_s29 + $0x10] sm:$0xff]  }
 0x583   : > { %v1477_v19 = vpop.permute.xlu0 %1476 }
 0x585   : > { %v1466_v18 = vpop.permute.xlu1 %1465 }
 0x586   : > { %1472 = vst.msk [vmem:[#allocation3] sm:$0xff] %vm1471_vm7, %v1466_v18  ;;  %v3867_v18 = vld [vmem:[%s4547_s0 + $0x8] ss:$24 sps:$4 sm:$0xff]  }
 0x587   : > { %1483 = vst.msk [vmem:[#allocation3] sm:$0xff] %vm1482_vm8, %v1477_v19  ;;  %v3872_v19 = vld [vmem:[%s4547_s0 + $0x164] ss:$24 sps:$4 sm:$0xff]  }
 0x588   : > { %2426 = vmatprep.subr.bf16.mxu1 %v3872_v19  ;;  %v3911_v19 = vld [vmem:[%s4552_s29 + $0x48] sm:$0xff]  }
 0x589   : > { %v1479_v21 = vpop.permute.xlu1 %1478 }
 0x58b   : > { %v1664_v7 = vpop.permute.xlu0 %1663 }
 0x58c   : > { %1669 = vst.msk [vmem:[#allocation3 + $0x10] sm:$0xff] %vm1283_vm6, %v1664_v7 }
 0x58d   : > { %v1468_v4 = vpop.permute.xlu1 %1467 }
 0x58e   : > { %1473 = vst.msk [vmem:[#allocation3 + $0x8] sm:$0xff] %vm1471_vm7, %v1468_v4  ;;  %v1868_v24 = vld [vmem:[#allocation3] sm:$0xff] }
 0x58f   : > { %1484 = vst.msk [vmem:[#allocation3 + $0x8] sm:$0xff] %vm1482_vm8, %v1479_v21 }
 0x591   : > { %v1666_v22 = vpop.permute.xlu1 %1665 }
 0x592   : > { %1670 = vst.msk [vmem:[#allocation3 + $0x18] sm:$0xff] %vm1283_vm6, %v1666_v22 }
 0x596   : > { %v1869_v25 = vld [vmem:[#allocation3 + $0x8] sm:$0xff] }
 0x597   : > { %v1872_v12 = vpack.c.bf16 %v1869_v25, %v1868_v24 }
 0x599   : > { %3616 = vmatprep.mubr.bf16.mxu0 %v1872_v12 }
 0x5c3   : > { %v1851_v15 = vpop.permute.xlu0 %1850 }
 0x5c4   : > { %1856 = vst.msk [vmem:[#allocation3 + $0x10] sm:$0xff] %vm1471_vm7, %v1851_v15 }
 0x5c7   : > { %v1861_v28 = vpop.permute.xlu0 %1860  ;;  %v1853_v29 = vpop.permute.xlu1 %1852 }
 0x5c8   : > { %1866 = vst.msk [vmem:[#allocation3 + $0x10] sm:$0xff] %vm1482_vm8, %v1861_v28 }
 0x5c9   : > { %1857 = vst.msk [vmem:[#allocation3 + $0x18] sm:$0xff] %vm1471_vm7, %v1853_v29 }
 0x5cb   : > { %v1863_v27 = vpop.permute.xlu1 %1862 }
 0x5cc   : > { %1867 = vst.msk [vmem:[#allocation3 + $0x18] sm:$0xff] %vm1482_vm8, %v1863_v27 }
 0x5cf   : > { %v1870_v31 = vld [vmem:[#allocation3 + $0x10] sm:$0xff] }
 0x5d3   : > { %v1871_v20 = vld [vmem:[#allocation3 + $0x18] sm:$0xff] }
 0x5d4   : > { %v1873_v32 = vpack.c.bf16 %v1871_v20, %v1870_v31 }
 0x5d6   : > { %3617 = vmatmul.mubr.bf16.vlgmr.msra.gmra.mxu0 %v1873_v32 }
 0x5d7   : > { %2405 = vmatprep.mubr.bf16.mxu0 %v4315_v40  ;;  %2374 = vmatpush1.bf16.msra.mxu0 %v3825_v26 }
 0x5d8   : > { %2375 = vmatprep.subr.bf16.mxu0 %v3833_v42  ;;  %v3881_v42 = vld [vmem:[%s4547_s0 + $0xd4] ss:$24 sps:$4 sm:$0xff]  }
 0x5db   : > { %2376 = vmatpush1.bf16.msra.mxu0 %v3831_v61  ;;  %v3879_v61 = vld [vmem:[%s4547_s0 + $0xd0] ss:$24 sps:$4 sm:$0xff]  }
 0x5dc   : > { %2377 = vmatprep.subr.bf16.mxu0 %v3839_v1  ;;  %v3887_v1 = vld [vmem:[%s4547_s0 + $0x74] ss:$24 sps:$4 sm:$0xff]  }
 0x5df   : > { %2378 = vmatpush1.bf16.msra.mxu0 %v3837_v2  ;;  %v3885_v2 = vld [vmem:[%s4547_s0 + $0x70] ss:$24 sps:$4 sm:$0xff]  }
 0x5e0   : > { %2379 = vmatprep.subr.bf16.mxu0 %v3845_v38  ;;  %v3893_v38 = vld [vmem:[%s4547_s0 + $0x14] ss:$24 sps:$4 sm:$0xff]  }
 0x5e3   : > { %2380 = vmatpush1.bf16.msra.mxu0 %v3843_v8  ;;  %v3891_v8 = vld [vmem:[%s4547_s0 + $0x10] ss:$24 sps:$4 sm:$0xff]  }
 0x5e4   : > { %2381 = vmatprep.subr.bf16.mxu0 %v3851_v52  ;;  %v3896_v52 = vld [vmem:[%s4552_s29 + $0x70] sm:$0xff]  }
 0x5e7   : > { %2382 = vmatpush1.bf16.msra.mxu0 %v3849_v5  ;;  %v3897_v5 = vld [vmem:[%s4552_s29 + $0x30] sm:$0xff]  }
 0x5e8   : > { %2383 = vmatprep.subr.bf16.mxu0 %v3857_v11  ;;  %v3901_v11 = vld [vmem:[%s4552_s29 + $0xb0] sm:$0xff]  }
 0x5eb   : > { %2384 = vmatpush1.bf16.msra.mxu0 %v3855_v55  ;;  %v3902_v55 = vld [vmem:[%s4552_s29 + $0x60] sm:$0xff]  }
 0x5ec   : > { %2385 = vmatprep.subr.bf16.mxu0 %v3863_v14  ;;  %v3904_v14 = vld [vmem:[%s4552_s29 + $0xa8] sm:$0xff]  }
 0x5ef   : > { %2386 = vmatpush1.bf16.msra.mxu0 %v3861_v60  ;;  %v3906_v60 = vld [vmem:[%s4552_s29 + $0x18] sm:$0xff]  }
 0x5f0   : > { %2387 = vmatprep.subr.bf16.mxu0 %v3869_v39  ;;  %v3908_v39 = vld [vmem:[%s4552_s29 + $0x50] sm:$0xff]  }
 0x5f3   : > { %2388 = vmatpush1.bf16.msra.mxu0 %v3867_v18  ;;  %v3910_v18 = vld [vmem:[%s4552_s29 + $0x98] sm:$0xff]  }
 0x5f4   : > { %3514 = vmatprep.subr.bf16.mxu0 %v3894_v10 }
 0x696   : > { %v3618_v41 = vpop.f32.mrf.mxu0 }
 0x697   : > { %v4929_v49 = vadd.f32 %v4047_v59, %v3618_v41 }
 0x698   : > { %v1972_v44 = vpop.f32.mrf.mxu0 }
 0x699   : > { %v4927_v47 = vadd.f32 %v4046_v46, %v1972_v44  ;;  %v1993_v56 = vmul.f32 %v4929_v49, %v4929_v49  ;;  %v3870_v44 = vld [vmem:[%s4547_s0 + $0x160] ss:$24 sps:$4 sm:$0xff]  }
 0x69a   : > { %v3619_v45 = vpop.f32.mrf.mxu0 }
 0x69b   : > { %v1991_v50 = vmul.f32 %v4927_v47, %v4927_v47  ;;  %v4935_v54 = vadd.f32 %v4049_v43, %v3619_v45  ;;  %v3875_v45 = vld [vmem:[%s4547_s0 + $0x134] ss:$24 sps:$4 sm:$0xff]  }
 0x69c   : > { %v1975_v51 = vpop.f32.mrf.mxu0 }
 0x69d   : > { %v4933_v53 = vadd.f32 %v4048_v34, %v1975_v51  ;;  %1995 = vadd.xlane.f32.xlu0 %v1991_v50  ;;  %v1994_v58 = vmul.f32 %v4935_v54, %v4935_v54  ;;  %v3873_v51 = vld [vmem:[%s4547_s0 + $0x130] ss:$24 sps:$4 sm:$0xff]   ;;  %v3878_v34 = vld [vmem:[%s4547_s0 + $0x104] ss:$24 sps:$4 sm:$0xff]  }
 0x69f   : > { %v1992_v57 = vmul.f32 %v4933_v53, %v4933_v53 }
 0x6a1   : > { %1999 = vadd.xlane.f32.xlu0 %v1993_v56  ;;  %1997 = vadd.xlane.f32.xlu1 %v1992_v57  ;;  %v3876_v57 = vld [vmem:[%s4547_s0 + $0x100] ss:$24 sps:$4 sm:$0xff]  }
 0x6a5   : > { %2001 = vadd.xlane.f32.xlu0 %v1994_v58 }
 0x726   : > { %v1996_v21 = vpop.xlane.xlu0 %1995 }
 0x727   : > { %v2003_v7 = vmul.f32 0.0078125, %v1996_v21  ;;  %v3912_v21 = vld [vmem:[%s4552_s29 + $0x8] sm:$0xff]  }
 0x729   : > { %v2007_v4 = vadd.f32 1e-05, %v2003_v7  ;;  %v3913_v7 = vld [vmem:[%s4552_s29 + $0x90] sm:$0xff]  }
 0x72a   : > { %v2000_v22 = vpop.xlane.xlu0 %1999  ;;  %v1998_v24 = vpop.xlane.xlu1 %1997 }
 0x72b   : > { %v2004_v25 = vmul.f32 0.0078125, %v1998_v24  ;;  %3990 = vrsqrt.f32 %v2007_v4  ;;  %v2005_v12 = vmul.f32 0.0078125, %v2000_v22  ;;  %v3914_v4 = vld [vmem:[%s4552_s29 + $0x40] sm:$0xff]   ;;  %v3916_v24 = vld [vmem:[%s4552_s29 + $0x88] sm:$0xff]  }
 0x72c   : > { %v3915_v22 = vld [vmem:[%s4552_s29] sm:$0xff]  }
 0x72d   : > { %v2008_v15 = vadd.f32 1e-05, %v2004_v25  ;;  %v2009_v27 = vadd.f32 1e-05, %v2005_v12  ;;  %v3917_v25 = vld [vmem:[%s4552_s29 + $0x80] sm:$0xff]  }
 0x72e   : > { %v2002_v28 = vpop.xlane.xlu0 %2001 }
 0x72f   : > { %v2006_v29 = vmul.f32 0.0078125, %v2002_v28  ;;  %3992 = vrsqrt.f32 %v2008_v15 }
 0x731   : > { %v2010_v31 = vadd.f32 1e-05, %v2006_v29 }
 0x733   : > { %3994 = vrsqrt.f32 %v2010_v31 }
 0x734   : > { %3996 = vrsqrt.f32 %v2009_v27 }
 0x738   : > { %v3991_v20 = vpop.eup %3990 }
 0x739   : > { %v2015_v32 = vmul.f32 %v3991_v20, %v4927_v47 }
 0x73b   : > { %v2026_v37 = vmul.f32 %v3371_v33, %v2015_v32 }
 0x73c   : > { %v3993_v23 = vpop.eup %3992 }
 0x73d   : > { %v2016_v26 = vmul.f32 %v3993_v23, %v4933_v53 }
 0x73f   : > { %v2027_v30 = vmul.f32 %v3371_v33, %v2016_v26 }
 0x740   : > { %v3995_v36 = vpop.eup %3994 }
 0x741   : > { %v3997_v41 = vpop.eup %3996  ;;  %v2030_v46 = vpack.c.bf16 %v2027_v30, %v2026_v37  ;;  %v2018_v59 = vmul.f32 %v3995_v36, %v4935_v54 }
 0x742   : > { %v2017_v50 = vmul.f32 %v3997_v41, %v4929_v49 }
 0x743   : > { %2353 = vmatmul.mubr.bf16.vlgmr.msra.gmra.mxu1 %v2030_v46  ;;  %2406 = vmatmul.mubr.bf16.vlgmr.msra.gmra.mxu0 %v2030_v46  ;;  %v2029_v43 = vmul.f32 %v3371_v33, %v2018_v59 }
 0x744   : > { %2427 = vmatpush1.bf16.msra.mxu1 %v3870_v44  ;;  %2362 = vmatprep.mubr.bf16.mxu1 %v4315_v40  ;;  %v2028_v56 = vmul.f32 %v3371_v33, %v2017_v50 }
 0x745   : > { %2428 = vmatprep.subr.bf16.mxu1 %v3875_v45  ;;  %2415 = vmatprep.mubr.bf16.mxu0 %v4315_v40 }
 0x746   : > { %v2031_v58 = vpack.c.bf16 %v2029_v43, %v2028_v56  ;;  %3515 = vmatpush3.bf16.msra.mxu0 %v3895_v35 }
 0x747   : > { %3516 = vmatprep.subr.bf16.mxu0 %v3896_v52 }
 0x748   : > { %2429 = vmatpush1.bf16.msra.mxu1 %v3873_v51 }
 0x749   : > { %2430 = vmatprep.subr.bf16.mxu1 %v3878_v34 }
 0x74a   : > { %3517 = vmatpush3.bf16.msra.mxu0 %v3897_v5 }
 0x74b   : > { %2363 = vmatmul.mubr.bf16.gmra.mxu1 %v2031_v58  ;;  %2416 = vmatmul.mubr.bf16.gmra.mxu0 %v2031_v58 }
 0x74c   : > { %2431 = vmatpush1.bf16.msra.mxu1 %v3876_v57  ;;  %2458 = vmatprep.mubr.bf16.mxu1 %v4315_v40 }
 0x74d   : > { %2432 = vmatprep.subr.bf16.mxu1 %v3881_v42  ;;  %3518 = vmatprep.subr.bf16.mxu0 %v3899_v9 }
 0x750   : > { %2433 = vmatpush1.bf16.msra.mxu1 %v3879_v61 }
 0x751   : > { %2434 = vmatprep.subr.bf16.mxu1 %v3884_v62 }
 0x754   : > { %2435 = vmatpush1.bf16.msra.mxu1 %v3882_v0 }
 0x755   : > { %2436 = vmatprep.subr.bf16.mxu1 %v3887_v1 }
 0x758   : > { %2437 = vmatpush1.bf16.msra.mxu1 %v3885_v2 }
 0x759   : > { %2438 = vmatprep.subr.bf16.mxu1 %v3890_v3 }
 0x75c   : > { %2439 = vmatpush1.bf16.msra.mxu1 %v3888_v48 }
 0x75d   : > { %2440 = vmatprep.subr.bf16.mxu1 %v3893_v38 }
 0x760   : > { %2441 = vmatpush1.bf16.msra.mxu1 %v3891_v8 }
 0x761   : > { %3620 = vmatprep.subr.bf16.mxu1 %v3898_v6 }
 0x763   : > { %2459 = vmatmul.mubr.bf16.vlgmr.msra.gmra.mxu1 %v2030_v46 }
 0x764   : > { %2468 = vmatprep.mubr.bf16.mxu1 %v4315_v40  ;;  %3621 = vmatpush3.bf16.msra.mxu1 %v3898_v6  ;;  %v3900_v40 = vld [vmem:[%s4552_s29 + $0x28] sm:$0xff]  }
 0x765   : > { %3519 = vmatpush3.bf16.msra.mxu0 %v3900_v40  ;;  %3622 = vmatprep.subr.bf16.mxu1 %v3901_v11 }
 0x766   : > { %3520 = vmatprep.subr.bf16.mxu0 %v3902_v55 }
 0x768   : > { %3623 = vmatpush3.bf16.msra.mxu1 %v3901_v11 }
 0x769   : > { %3521 = vmatpush3.bf16.msra.mxu0 %v3903_v13  ;;  %3624 = vmatprep.subr.bf16.mxu1 %v3904_v14 }
 0x76a   : > { %3522 = vmatprep.subr.bf16.mxu0 %v3905_v16 }
 0x76b   : > { %2469 = vmatmul.mubr.bf16.gmra.mxu1 %v2031_v58 }
 0x76c   : > { %3625 = vmatpush3.bf16.msra.mxu1 %v3904_v14 }
 0x76d   : > { %3523 = vmatpush3.bf16.msra.mxu0 %v3906_v60  ;;  %3626 = vmatprep.subr.bf16.mxu1 %v3907_v63 }
 0x76e   : > { %3524 = vmatprep.subr.bf16.mxu0 %v3908_v39 }
 0x770   : > { %3627 = vmatpush3.bf16.msra.mxu1 %v3907_v63 }
 0x771   : > { %3525 = vmatpush3.bf16.msra.mxu0 %v3909_v17  ;;  %3628 = vmatprep.subr.bf16.mxu1 %v3910_v18 }
 0x772   : > { %3526 = vmatprep.subr.bf16.mxu0 %v3911_v19 }
 0x774   : > { %3629 = vmatpush3.bf16.msra.mxu1 %v3910_v18 }
 0x775   : > { %3527 = vmatpush3.bf16.msra.mxu0 %v3912_v21  ;;  %3630 = vmatprep.subr.bf16.mxu1 %v3913_v7 }
 0x776   : > { %3528 = vmatprep.subr.bf16.mxu0 %v3914_v4 }
 0x778   : > { %3631 = vmatpush3.bf16.msra.mxu1 %v3913_v7 }
 0x779   : > { %3529 = vmatpush3.bf16.msra.mxu0 %v3915_v22  ;;  %3632 = vmatprep.subr.bf16.mxu1 %v3916_v24 }
 0x77c   : > { %3633 = vmatpush3.bf16.msra.mxu1 %v3916_v24 }
 0x77d   : > { %3634 = vmatprep.subr.bf16.mxu1 %v3917_v25 }
 0x780   : > { %3635 = vmatpush3.bf16.msra.mxu1 %v3917_v25 }
 0x803   : > { %v5019_v12 = vpop.f32.mrf.mxu1  ;;  %v5021_v15 = vpop.f32.mrf.mxu0 }
 0x804   : > { %v3420_v28 = vmul.f32 -1.442695, %v5019_v12  ;;  %v3422_v29 = vmul.f32 -1.442695, %v5021_v15 }
 0x805   : > { %v5025_v27 = vpop.f32.mrf.mxu1  ;;  %v5027_v31 = vpop.f32.mrf.mxu0 }
 0x806   : > { %3998 = vpow2.f32 %v3420_v28  ;;  %v3421_v20 = vmul.f32 -1.442695, %v5025_v27 }
 0x807   : > { %4000 = vpow2.f32 %v3422_v29  ;;  %v5030_v32 = vpop.f32.mrf.mxu1  ;;  %v5032_v23 = vpop.f32.mrf.mxu0 }
 0x808   : > { %4002 = vpow2.f32 %v3421_v20  ;;  %v3423_v33 = vmul.f32 -1.442695, %v5030_v32  ;;  %v3425_v26 = vmul.f32 -1.442695, %v5032_v23 }
 0x809   : > { %v5036_v36 = vpop.f32.mrf.mxu1  ;;  %v5038_v37 = vpop.f32.mrf.mxu0 }
 0x80a   : > { %4004 = vpow2.f32 %v3423_v33  ;;  %v3424_v30 = vmul.f32 -1.442695, %v5036_v36 }
 0x80b   : > { %4006 = vpow2.f32 %v3425_v26  ;;  %v5041_v41 = vpop.f32.mrf.mxu1  ;;  %v5043_v44 = vpop.f32.mrf.mxu0 }
 0x80c   : > { %4008 = vpow2.f32 %v3424_v30  ;;  %v3426_v46 = vmul.f32 -1.442695, %v5041_v41  ;;  %v3428_v45 = vmul.f32 -1.442695, %v5043_v44 }
 0x80d   : > { %v5047_v59 = vpop.f32.mrf.mxu1  ;;  %v5049_v50 = vpop.f32.mrf.mxu0 }
 0x80e   : > { %4010 = vpow2.f32 %v3426_v46  ;;  %v3427_v51 = vmul.f32 -1.442695, %v5047_v59 }
 0x80f   : > { %4012 = vpow2.f32 %v3428_v45  ;;  %v5052_v34 = vpop.f32.mrf.mxu1  ;;  %v5054_v43 = vpop.f32.mrf.mxu0 }
 0x810   : > { %4014 = vpow2.f32 %v3427_v51  ;;  %v3429_v56 = vmul.f32 -1.442695, %v5052_v34  ;;  %v3431_v57 = vmul.f32 -1.442695, %v5054_v43 }
 0x811   : > { %v5058_v58 = vpop.f32.mrf.mxu1 }
 0x812   : > { %4016 = vpow2.f32 %v3429_v56  ;;  %v3430_v42 = vmul.f32 -1.442695, %v5058_v58 }
 0x813   : > { %v3999_v61 = vpop.eup %3998  ;;  %4018 = vpow2.f32 %v3431_v57 }
 0x814   : > { %v4001_v62 = vpop.eup %4000  ;;  %4020 = vpow2.f32 %v3430_v42  ;;  %v2515_v1 = vadd.f32 1.0, %v3999_v61 }
 0x815   : > { %v4003_v0 = vpop.eup %4002  ;;  %v2517_v2 = vadd.f32 1.0, %v4001_v62 }
 0x816   : > { %v2516_v3 = vadd.f32 1.0, %v4003_v0 }
 0x817   : > { %v4005_v48 = vpop.eup %4004  ;;  %4022 = vrcp.f32 %v2517_v2 }
 0x818   : > { %v4007_v38 = vpop.eup %4006  ;;  %4024 = vrcp.f32 %v2516_v3  ;;  %v2518_v8 = vadd.f32 1.0, %v4005_v48 }
 0x819   : > { %v4009_v10 = vpop.eup %4008  ;;  %4026 = vrcp.f32 %v2515_v1  ;;  %v2520_v35 = vadd.f32 1.0, %v4007_v38 }
 0x81a   : > { %4028 = vrcp.f32 %v2518_v8  ;;  %v2519_v52 = vadd.f32 1.0, %v4009_v10 }
 0x81b   : > { %v4011_v5 = vpop.eup %4010  ;;  %4030 = vrcp.f32 %v2520_v35 }
 0x81c   : > { %v4013_v6 = vpop.eup %4012  ;;  %4032 = vrcp.f32 %v2519_v52  ;;  %v2521_v40 = vadd.f32 1.0, %v4011_v5  ;;  %v2423_v5 = vpop.f32.mrf.mxu0 }
 0x81d   : > { %v4015_v9 = vpop.eup %4014  ;;  %v2523_v11 = vadd.f32 1.0, %v4013_v6 }
 0x81e   : > { %v2522_v55 = vadd.f32 1.0, %v4015_v9 }
 0x81f   : > { %v4017_v13 = vpop.eup %4016  ;;  %4034 = vrcp.f32 %v2523_v11 }
 0x820   : > { %v4019_v14 = vpop.eup %4018  ;;  %4036 = vrcp.f32 %v2522_v55  ;;  %v2524_v16 = vadd.f32 1.0, %v4017_v13 }
 0x821   : > { %v4021_v60 = vpop.eup %4020  ;;  %4038 = vrcp.f32 %v2521_v40  ;;  %v2526_v63 = vadd.f32 1.0, %v4019_v14 }
 0x822   : > { %4040 = vrcp.f32 %v2524_v16  ;;  %v2525_v39 = vadd.f32 1.0, %v4021_v60 }
 0x823   : > { %4042 = vrcp.f32 %v2526_v63  ;;  %v2460_v17 = vpop.f32.mrf.mxu1 }
 0x824   : > { %v4023_v18 = vpop.eup %4022  ;;  %4044 = vrcp.f32 %v2525_v39 }
 0x825   : > { %v4025_v19 = vpop.eup %4024  ;;  %v2462_v21 = vpop.f32.mrf.mxu1  ;;  %v2553_v22 = vmul.f32 %v4023_v18, %v5021_v15 }
 0x826   : > { %v4027_v7 = vpop.eup %4026  ;;  %v2552_v28 = vmul.f32 %v4025_v19, %v5025_v27 }
 0x827   : > { %v4029_v4 = vpop.eup %4028  ;;  %v2464_v24 = vpop.f32.mrf.mxu1  ;;  %v2551_v33 = vmul.f32 %v4027_v7, %v5019_v12  ;;  %v2565_v51 = vmul.f32 %v2553_v22, %v2462_v21 }
 0x828   : > { %v4031_v25 = vpop.eup %4030  ;;  %v2554_v29 = vmul.f32 %v4029_v4, %v5030_v32  ;;  %v2564_v42 = vmul.f32 %v2552_v28, %v2460_v17 }
 0x829   : > { %v4033_v20 = vpop.eup %4032  ;;  %v2556_v26 = vmul.f32 %v4031_v25, %v5032_v23  ;;  %v2466_v30 = vpop.f32.mrf.mxu1  ;;  %v2563_v27 = vmul.f32 %v2551_v33, %v5027_v31 }
 0x82a   : > { %v2555_v46 = vmul.f32 %v4033_v20, %v5036_v36  ;;  %v2566_v45 = vmul.f32 %v2554_v29, %v5038_v37 }
 0x82b   : > { %v2568_v56 = vmul.f32 %v2556_v26, %v2466_v30  ;;  %v2470_v57 = vpop.f32.mrf.mxu1 }
 0x82c   : > { %v4035_v15 = vpop.eup %4034  ;;  %v2567_v61 = vmul.f32 %v2555_v46, %v2464_v24  ;;  %v2575_v23 = vpack.c.bf16 %v2566_v45, %v2563_v27 }
 0x82d   : > { %v4037_v62 = vpop.eup %4036  ;;  %v2577_v32 = vpack.c.bf16 %v2568_v56, %v2565_v51  ;;  %v2472_v0 = vpop.f32.mrf.mxu1  ;;  %v2559_v3 = vmul.f32 %v4035_v15, %v5043_v44 }
 0x82e   : > { %v4039_v1 = vpop.eup %4038  ;;  %v2576_v12 = vpack.c.bf16 %v2567_v61, %v2564_v42  ;;  %v2558_v48 = vmul.f32 %v4037_v62, %v5047_v59 }
 0x82f   : > { %v4041_v2 = vpop.eup %4040  ;;  %v2474_v36 = vpop.f32.mrf.mxu1  ;;  %3636 = vmatprep.mubr.bf16.mxu1 %v2577_v32  ;;  %v2557_v10 = vmul.f32 %v4039_v1, %v5041_v41  ;;  %v2571_v44 = vmul.f32 %v2559_v3, %v2472_v0 }
 0x830   : > { %v4043_v37 = vpop.eup %4042  ;;  %v2560_v38 = vmul.f32 %v4041_v2, %v5052_v34  ;;  %2805 = vmatprep.mubr.bf16.mxu0 %v2576_v12  ;;  %v2570_v40 = vmul.f32 %v2558_v48, %v2470_v57 }
 0x831   : > { %v4045_v8 = vpop.eup %4044  ;;  %v2562_v31 = vmul.f32 %v4043_v37, %v5054_v43  ;;  %v2476_v35 = vpop.f32.mrf.mxu1  ;;  %2806 = vmatmul.mubr.bf16.vlgmr.msra.gmra.mxu0 %v2575_v23  ;;  %v2569_v59 = vmul.f32 %v2557_v10, %v5049_v50 }
 0x832   : > { %v2561_v52 = vmul.f32 %v4045_v8, %v5058_v58  ;;  %v2572_v6 = vmul.f32 %v2560_v38, %v2423_v5 }
 0x833   : > { %v2574_v9 = vmul.f32 %v2562_v31, %v2476_v35 }
 0x834   : > { %v2573_v11 = vmul.f32 %v2561_v52, %v2474_v36  ;;  %v2578_v13 = vpack.c.bf16 %v2572_v6, %v2569_v59 }
 0x835   : > { %v2580_v55 = vpack.c.bf16 %v2574_v9, %v2571_v44 }
 0x836   : > { %v2579_v34 = vpack.c.bf16 %v2573_v11, %v2570_v40 }
 0x837   : > { %3637 = vmatmul.mubr.bf16.vlgmr.msra.gmra.mxu1 %v2580_v55 }
 0x838   : > { %2813 = vmatprep.mubr.bf16.mxu0 %v2579_v34 }
 0x839   : > { %2814 = vmatmul.mubr.bf16.gmra.mxu0 %v2578_v13 }
 0x8f1   : > { %v3530_v41 = vpop.f32.mrf.mxu0 }
 0x8f3   : > { %v3531_v43 = vpop.f32.mrf.mxu0 }
 0x8f4   : > { %v3532_v58 = vadd.f32 %v3531_v43, %v3530_v41 }
 0x8f5   : > { %v3533_v14 = vpop.f32.mrf.mxu0 }
 0x8f7   : > { %v3638_v16 = vpop.f32.mrf.mxu1  ;;  %v3534_v60 = vpop.f32.mrf.mxu0 }
 0x8f8   : > { %v3535_v21 = vadd.f32 %v3534_v60, %v3533_v14 }
 0x8f9   : > { %v2856_v63 = vpop.f32.mrf.mxu1  ;;  %v3536_v39 = vpop.f32.mrf.mxu0 }
 0x8fa   : > { %v2857_v17 = vadd.f32 %v3532_v58, %v2856_v63 }
 0x8fb   : > { %v3639_v18 = vpop.f32.mrf.mxu1  ;;  %v3537_v19 = vpop.f32.mrf.mxu0 }
 0x8fc   : > { %v5077_v50 = vadd.f32 %v2857_v17, %v4927_v47  ;;  %v3538_v7 = vadd.f32 %v3537_v19, %v3536_v39 }
 0x8fd   : > { %v2859_v4 = vpop.f32.mrf.mxu1  ;;  %v3539_v22 = vpop.f32.mrf.mxu0 }
 0x8fe   : > { %2875 = vst [vmem:[#allocation2 + $0x10] sm:$0xff] %v5077_v50  ;;  %v2865_v24 = vadd.f32 %v3638_v16, %v3538_v7  ;;  %v2860_v25 = vadd.f32 %v3535_v21, %v2859_v4 }
 0x8ff   : > { %v3540_v28 = vpop.f32.mrf.mxu0 }
 0x900   : > { %v5081_v29 = vadd.f32 %v2865_v24, %v4929_v49  ;;  %v5084_v20 = vadd.f32 %v2860_v25, %v4933_v53  ;;  %v3541_v33 = vadd.f32 %v3540_v28, %v3539_v22 }
 0x902   : > { %2877 = vst [vmem:[#allocation2 + $0x18] sm:$0xff] %v5081_v29  ;;  %2876 = vst [vmem:[#allocation2] sm:$0xff] %v5084_v20  ;;  %v2868_v47 = vadd.f32 %v3639_v18, %v3541_v33  ;;  %2882 = sbr.rel (%p3456_p0) target bundleno = 2680 (0xa78), region = 92 }
 0x904   : > { %v5089_v26 = vadd.f32 %v2868_v47, %v4935_v54 }
 0x906   : > { %2878 = vst [vmem:[#allocation2 + $0x8] sm:$0xff] %v5089_v26 }
 0x907   : > { %v2885_v49 = vmul.f32 %v5081_v29, %v5081_v29  ;;  %v2883_v53 = vmul.f32 %v5077_v50, %v5077_v50  ;;  %v4050_v30 = vld [vmem:[#allocation12 + $0x74] ss:$8 sps:$4 sm:$0xff]   ;;  %v4052_v46 = vld [vmem:[#allocation12 + $0x70] ss:$8 sps:$4 sm:$0xff]   ;;  %v2886_v45 = vmul.f32 %v5089_v26, %v5089_v26  ;;  %v2884_v54 = vmul.f32 %v5084_v20, %v5084_v20  ;;  %v4053_v51 = vld [vmem:[#allocation12 + $0x64] ss:$8 sps:$4 sm:$0xff]  }
 0x908   : > { %3020 = vmatprep.subr.bf16.mxu0 %v4050_v30  ;;  %3640 = vmatprep.subr.bf16.mxu1 %v4050_v30  ;;  %v4055_v56 = vld [vmem:[#allocation12 + $0x60] ss:$8 sps:$4 sm:$0xff]   ;;  %v4056_v57 = vld [vmem:[#allocation12 + $0x54] ss:$8 sps:$4 sm:$0xff]   ;;  %v4058_v15 = vld [vmem:[#allocation12 + $0x50] ss:$8 sps:$4 sm:$0xff]  }
 0x909   : > { %2891 = vadd.xlane.f32.xlu1 %v2885_v49  ;;  %2887 = vadd.xlane.f32.xlu0 %v2883_v53  ;;  %v4059_v42 = vld [vmem:[#allocation12 + $0x44] ss:$8 sps:$4 sm:$0xff]   ;;  %v4061_v61 = vld [vmem:[#allocation12 + $0x40] ss:$8 sps:$4 sm:$0xff]   ;;  %v4062_v62 = vld [vmem:[#allocation12 + $0x34] ss:$8 sps:$4 sm:$0xff]  }
 0x90a   : > { %3021 = vmatpush1.bf16.msra.mxu0 %v4052_v46  ;;  %3648 = vmatpush1.bf16.msra.mxu1 %v4052_v46  ;;  %v4064_v27 = vld [vmem:[#allocation12 + $0x30] ss:$8 sps:$4 sm:$0xff]   ;;  %v4065_v32 = vld [vmem:[#allocation12 + $0x24] ss:$8 sps:$4 sm:$0xff]   ;;  %v4067_v0 = vld [vmem:[#allocation12 + $0x20] ss:$8 sps:$4 sm:$0xff]  }
 0x90b   : > { %3022 = vmatprep.subr.bf16.mxu0 %v4053_v51  ;;  %3641 = vmatprep.subr.bf16.mxu1 %v4053_v51  ;;  %v4068_v1 = vld [vmem:[#allocation12 + $0x14] ss:$8 sps:$4 sm:$0xff]   ;;  %v4070_v12 = vld [vmem:[#allocation12 + $0x10] ss:$8 sps:$4 sm:$0xff]   ;;  %v4071_v2 = vld [vmem:[#allocation12 + $0x4] ss:$8 sps:$4 sm:$0xff]  }
 0x90c   : > { %v4073_v23 = vld [vmem:[#allocation12] ss:$8 sps:$4 sm:$0xff]   ;;  %v4319_v3 = vmov 0   ;;  %v3457_v34 = vld [vmem:[#allocation10] ss:$0 sm:$0xff] }
 0x90d   : > { %2893 = vadd.xlane.f32.xlu1 %v2886_v45  ;;  %2889 = vadd.xlane.f32.xlu0 %v2884_v54 }
 0x90e   : > { %3023 = vmatpush1.bf16.msra.mxu0 %v4055_v56  ;;  %3649 = vmatpush1.bf16.msra.mxu1 %v4055_v56 }
 0x90f   : > { %3024 = vmatprep.subr.bf16.mxu0 %v4056_v57  ;;  %3642 = vmatprep.subr.bf16.mxu1 %v4056_v57 }
 0x910   : > { %3052 = vmatprep.mubr.bf16.mxu0 %v4319_v3  ;;  %3062 = vmatprep.mubr.bf16.mxu1 %v4319_v3 }
 0x912   : > { %3025 = vmatpush1.bf16.msra.mxu0 %v4058_v15  ;;  %3650 = vmatpush1.bf16.msra.mxu1 %v4058_v15 }
 0x913   : > { %3026 = vmatprep.subr.bf16.mxu0 %v4059_v42  ;;  %3643 = vmatprep.subr.bf16.mxu1 %v4059_v42 }
 0x916   : > { %3027 = vmatpush1.bf16.msra.mxu0 %v4061_v61  ;;  %3651 = vmatpush1.bf16.msra.mxu1 %v4061_v61 }
 0x917   : > { %3028 = vmatprep.subr.bf16.mxu0 %v4062_v62  ;;  %3644 = vmatprep.subr.bf16.mxu1 %v4062_v62 }
 0x91a   : > { %3029 = vmatpush1.bf16.msra.mxu0 %v4064_v27  ;;  %3652 = vmatpush1.bf16.msra.mxu1 %v4064_v27 }
 0x91b   : > { %3030 = vmatprep.subr.bf16.mxu0 %v4065_v32  ;;  %3645 = vmatprep.subr.bf16.mxu1 %v4065_v32 }
 0x91e   : > { %3031 = vmatpush1.bf16.msra.mxu0 %v4067_v0  ;;  %3653 = vmatpush1.bf16.msra.mxu1 %v4067_v0 }
 0x91f   : > { %3032 = vmatprep.subr.bf16.mxu0 %v4068_v1  ;;  %3646 = vmatprep.subr.bf16.mxu1 %v4068_v1 }
 0x922   : > { %3033 = vmatpush1.bf16.msra.mxu0 %v4070_v12  ;;  %3654 = vmatpush1.bf16.msra.mxu1 %v4070_v12 }
 0x923   : > { %3034 = vmatprep.subr.bf16.mxu0 %v4071_v2  ;;  %3647 = vmatprep.subr.bf16.mxu1 %v4071_v2 }
 0x926   : > { %3035 = vmatpush1.bf16.msra.mxu0 %v4073_v23  ;;  %3655 = vmatpush1.bf16.msra.mxu1 %v4073_v23 }
 0x992   : > { %v2892_v36 = vpop.xlane.xlu1 %2891  ;;  %v2888_v37 = vpop.xlane.xlu0 %2887 }
 0x993   : > { %v2897_v48 = vmul.f32 0.0078125, %v2892_v36  ;;  %v2895_v38 = vmul.f32 0.0078125, %v2888_v37 }
 0x995   : > { %v2901_v8 = vadd.f32 1e-05, %v2897_v48  ;;  %v2899_v10 = vadd.f32 1e-05, %v2895_v38 }
 0x996   : > { %v2894_v31 = vpop.xlane.xlu1 %2893  ;;  %v2890_v35 = vpop.xlane.xlu0 %2889 }
 0x997   : > { %4074 = vrsqrt.f32 %v2901_v8  ;;  %v2898_v52 = vmul.f32 0.0078125, %v2894_v31  ;;  %v2896_v5 = vmul.f32 0.0078125, %v2890_v35 }
 0x998   : > { %4076 = vrsqrt.f32 %v2899_v10 }
 0x999   : > { %v2902_v6 = vadd.f32 1e-05, %v2898_v52  ;;  %v2900_v44 = vadd.f32 1e-05, %v2896_v5 }
 0x99b   : > { %4078 = vrsqrt.f32 %v2902_v6 }
 0x99c   : > { %4080 = vrsqrt.f32 %v2900_v44 }
 0x9a4   : > { %v4075_v9 = vpop.eup %4074 }
 0x9a5   : > { %v4077_v40 = vpop.eup %4076  ;;  %v2909_v11 = vmul.f32 %v4075_v9, %v5081_v29 }
 0x9a6   : > { %v2907_v55 = vmul.f32 %v4077_v40, %v5077_v50 }
 0x9a7   : > { %v2920_v14 = vmul.f32 %v3457_v34, %v2909_v11 }
 0x9a8   : > { %v4079_v59 = vpop.eup %4078  ;;  %v2918_v60 = vmul.f32 %v3457_v34, %v2907_v55 }
 0x9a9   : > { %v4081_v13 = vpop.eup %4080  ;;  %v2910_v41 = vmul.f32 %v4079_v59, %v5089_v26 }
 0x9aa   : > { %v2908_v43 = vmul.f32 %v4081_v13, %v5084_v20 }
 0x9ab   : > { %v2921_v16 = vmul.f32 %v3457_v34, %v2910_v41 }
 0x9ac   : > { %v2919_v58 = vmul.f32 %v3457_v34, %v2908_v43 }
 0x9ad   : > { %v2923_v63 = vpack.c.bf16 %v2921_v16, %v2920_v14 }
 0x9ae   : > { %v2922_v39 = vpack.c.bf16 %v2919_v58, %v2918_v60 }
 0x9af   : > { %3063 = vmatmul.mubr.bf16.vlgmr.msra.gmra.mxu1 %v2923_v63 }
 0x9b0   : > { %3053 = vmatmul.mubr.bf16.vlgmr.msra.gmra.mxu0 %v2922_v39 }
 0xa6f   : > { %v3064_v17 = vpop.f32.mrf.mxu1 }
 0xa70   : > { %v3054_v18 = vpop.f32.mrf.mxu0  ;;  %3077 = vst [vmem:[#allocation13 + $0x20] sm:$0xff] %v3064_v17 }
 0xa71   : > { %3073 = vst [vmem:[#allocation13] sm:$0xff] %v3054_v18  ;;  %v3066_v19 = vpop.f32.mrf.mxu1 }
 0xa72   : > { %v3056_v21 = vpop.f32.mrf.mxu0  ;;  %3078 = vst [vmem:[#allocation13 + $0x28] sm:$0xff] %v3066_v19 }
 0xa73   : > { %3074 = vst [vmem:[#allocation13 + $0x8] sm:$0xff] %v3056_v21  ;;  %v3068_v50 = vpop.f32.mrf.mxu1 }
 0xa74   : > { %v3058_v7 = vpop.f32.mrf.mxu0  ;;  %3079 = vst [vmem:[#allocation13 + $0x30] sm:$0xff] %v3068_v50 }
 0xa75   : > { %3075 = vst [vmem:[#allocation13 + $0x10] sm:$0xff] %v3058_v7  ;;  %v3070_v4 = vpop.f32.mrf.mxu1 }
 0xa76   : > { %v3060_v22 = vpop.f32.mrf.mxu0  ;;  %3080 = vst [vmem:[#allocation13 + $0x38] sm:$0xff] %v3070_v4 }
 0xa77   : > { %3076 = vst [vmem:[#allocation13 + $0x18] sm:$0xff] %v3060_v22 }
 0xa78 PF: > { %p3702_p1 = scmp.eq.s32.totalorder %s4412_s23, 1  ;;  %s4320_s20 = smov [#allocation13]  }
 0xa79   : > { %s3091_s5 = sshll.u32 %s4320_s20, 4  ;;  %s3092_s5 = int_to_ptr.vmem [resolvable:$true] %s3091_s5 }
 0xa7a   : > { %s4218_s1 = scalar_lea.vmem %s3092_s5, 1024  ;;  %p4225_p13 = scmp.lt.s32.totalorder %s3092_s5, %s3092_s5 }
 0xa7b   : > { %p4219_p5 = scmp.ne.s32.totalorder %s3092_s5, %s4218_s1  ;;  %p4226_p10 = scmp.lt.s32.totalorder %s4218_s1, %s4218_s1 }
 0xa7d   : > { %p4220_p2 = pnand %p4219_p5, %p3702_p1  ;;  %p4227_p9 = por %p4226_p10, %p4225_p13 }
 0xa7f   : > { %p4221_p7 = pneg %p4220_p2 }
 0xa81   : > { %p4228_p4 = pnand %p4227_p9, %p4221_p7 }
 0xa83   : > { %4231 = shalt.err (!%p4228_p4)
}
 0xa84   : > { %s4321_s17 = smov 256   ;;  %s4322_s0 = smov 16  }
 0xa85   : > { %s5185_s24 = sld [smem:[#allocation26_spill]] }
 0xa8b   : > { %3677 = dma.vmem_to_hbm [thread:$0]  (%p3702_p1), %s3092_s5, 1024, %s5185_s24, [#allocation6], %s4321_s17, %s4321_s17, %s4322_s0  }
 0xa8c   : > { %4279 = dma.done.wait (%p3702_p1), [#allocation6], 1024  }
 0xa8d   : > { %4281 = vsyncadd (%p3702_p1), [#allocation6], 4294966272 }
 0xa8e PF: > { %s5186_s22 = sld [smem:[#allocation18_spill]]  ;;  %s5189_s17 = smov %s4288_s18 }
 0xa8f   : > { %s5187_s2 = sld [smem:[#allocation20_spill]]  ;;  %s5190_s18 = smov %s4292_s19 }
 0xa90   : > { %s5188_s27 = sld [smem:[#allocation19_spill]]  ;;  %s5192_s20 = smov %s4300_s21 }
 0xa94   : > { %s29_s22 = sadd.s32 1, %s5186_s22  }
 0xa95   : > { %p26_p11 = scmp.ge.s32.totalorder %s29_s22, 4   ;;  %s5191_s19 = smov %s5187_s2 }
 0xa96   : > { %s5193_s21 = smov %s5188_s27 }
 0xa97   :  { %28 = sbr.rel (!%p26_p11) target bundleno = 15 (0xf), region = 160 }
 0xa9c   :  { %3107 = vsyncpa [#allocation5], 1 }
 0xa9d   :  { %3109 = vsyncpa [#allocation5 + $0x1], 1 }
 0xa9e   :  { %3110 = vsyncpa [#allocation8], 1 }
 0xa9f   :  { %3112 = vsyncpa [#allocation8 + $0x1], 1 }
 0xaa0   :  { %3113 = vsyncpa [#allocation11], 1 }
 0xaa1   :  { %3114 = vsyncpa [#allocation6], 1 }
 0xaa2   :  { %3116 = vsyncpa [#allocation6 + $0x1], 1 }

</bundles_post_ra>
